<compile_context>
chip_gen: v7x
topology: tpu7x:2x2x1
jax: 0.10.0
libtpu: 0.0.40
codegen_flags: <defaults>
</compile_context>

<pallas_src>
import jax
import jax.numpy as jnp
from jax.experimental import pallas as pl
from jax.experimental.pallas import tpu as pltpu

NUM_GROUPS = 8
GN_EPS = 1e-5


def _attention_block_kernel(x_ref, gmat_ref, gamma_ref, beta_ref,
                            wqkv_ref, bqkv_ref, wp_ref, bp_ref, o_ref):
    # x_ref block: (1, C, HW) -> work on the (C, HW) slab for this batch item.
    x = x_ref[0]                                   # (C, HW) float32
    c = x.shape[0]

    # ---- GroupNorm(8, C): lane reduces + one-hot group matmul, one pass ----
    s1 = jnp.sum(x, axis=1, keepdims=True)         # (C, 1) per-channel sum
    s2 = jnp.sum(x * x, axis=1, keepdims=True)     # (C, 1) per-channel sumsq
    # gmat[i, j] = 1/(group_size*HW) if channels i and j share a group, else 0.
    mean = jnp.dot(gmat_ref[...], s1, preferred_element_type=jnp.float32)   # (C,1)
    msq = jnp.dot(gmat_ref[...], s2, preferred_element_type=jnp.float32)    # (C,1)
    rstd = jax.lax.rsqrt(msq - mean * mean + GN_EPS)                        # (C,1)
    xn = (x - mean) * (rstd * gamma_ref[...]) + beta_ref[...]               # (C,HW)

    # ---- fused Q/K/V projection: single (3C, C) @ (C, HW) MXU matmul ----
    qkv = (jnp.dot(wqkv_ref[...], xn, preferred_element_type=jnp.float32)
           + bqkv_ref[...])                        # (3C, HW)
    q = qkv[0 * c:1 * c]      # attention scale pre-folded into Wq / bq
    k = qkv[1 * c:2 * c]
    v = qkv[2 * c:3 * c]

    # ---- attention over spatial positions ----
    attn = jnp.dot(q.T, k, preferred_element_type=jnp.float32)              # (HW,HW)
    attn = jnp.exp(attn - jnp.max(attn, axis=-1, keepdims=True))
    attn = attn * pl.reciprocal(jnp.sum(attn, axis=-1, keepdims=True),
                                approx=True)
    # out[c, p] = sum_j v[c, j] * attn[p, j]  -> NT matmul (contract last dims)
    out = jax.lax.dot_general(v, attn, (((1,), (1,)), ((), ())),
                              preferred_element_type=jnp.float32)           # (C,HW)

    # ---- proj_out (1x1 conv) + residual ----
    out = (jnp.dot(wp_ref[...], out, preferred_element_type=jnp.float32)
           + bp_ref[...])
    o_ref[0] = (out + x).astype(o_ref.dtype)


def attention_block_pallas(x_nchw, params):
    """x_nchw: (N, C, H, W) float32. params: dict of weights (see init_params)."""
    n, c, h, w = x_nchw.shape
    hw = h * w
    scale = float(c) ** (-0.5)

    # NCHW -> (N, C, HW): pure reshape, no transpose.
    x_seq = x_nchw.reshape(n, c, hw)

    # Fuse Q/K/V and fold the attention scale into the Q projection.
    wqkv = jnp.concatenate(
        [params["wq"] * scale, params["wk"], params["wv"]], axis=0)          # (3C, C)
    bqkv = jnp.concatenate(
        [params["bq"] * scale, params["bk"], params["bv"]], axis=0
    ).reshape(3 * c, 1)                                                      # (3C, 1)

    # One-hot "same group" matrix with the 1/(group_size*HW) mean factor folded in.
    cs = c // NUM_GROUPS
    gid = jnp.arange(c) // cs
    gmat = (gid[:, None] == gid[None, :]).astype(jnp.float32) / float(cs * hw)

    gamma = params["gamma"].reshape(c, 1)
    beta = params["beta"].reshape(c, 1)
    wp = params["wp"]
    bp = params["bp"].reshape(c, 1)

    seq_spec = pl.BlockSpec((1, c, hw), lambda b: (b, 0, 0))
    cc_spec = pl.BlockSpec((c, c), lambda b: (0, 0))
    col_spec = pl.BlockSpec((c, 1), lambda b: (0, 0))

    # NOTE: weight specs are constant across the grid, so their DMAs run only
    # once; at these sizes the default double-buffered weight footprint is
    # negligible (see TODO above for production-size retiling).
    out_seq = pl.pallas_call(
        _attention_block_kernel,
        out_shape=jax.ShapeDtypeStruct((n, c, hw), x_seq.dtype),
        grid_spec=pltpu.PrefetchScalarGridSpec(
            num_scalar_prefetch=0,
            grid=(n,),
            in_specs=[
                seq_spec,                                     # x
                cc_spec,                                      # gmat (group means)
                col_spec, col_spec,                           # gamma, beta
                pl.BlockSpec((3 * c, c), lambda b: (0, 0)),   # Wqkv (fused, scaled)
                pl.BlockSpec((3 * c, 1), lambda b: (0, 0)),   # bqkv
                cc_spec, col_spec,                            # Wproj, bproj
            ],
            out_specs=seq_spec,
        ),
        compiler_params=pltpu.CompilerParams(
            dimension_semantics=("parallel",)),
    )(x_seq, gmat, gamma, beta, wqkv, bqkv, wp, bp)

    # (N, C, HW) -> NCHW: again a pure reshape.
    return out_seq.reshape(n, c, h, w)


def init_params(key, channels):
    """Deterministic synthetic params. Conv 1x1 weights stored as (C_out, C_in)."""
    ks = jax.random.split(key, 10)

    def mat(k):
        return (jax.random.normal(k, (channels, channels), jnp.float32)
                / jnp.sqrt(channels))

    def vec(k):
        return 0.1 * jax.random.normal(k, (channels,), jnp.float32)

    return {
        "gamma": 1.0 + 0.1 * jax.random.normal(ks[0], (channels,), jnp.float32),
        "beta": 0.1 * jax.random.normal(ks[1], (channels,), jnp.float32),
        "wq": mat(ks[2]), "bq": vec(ks[3]),
        "wk": mat(ks[4]), "bk": vec(ks[5]),
        "wv": mat(ks[6]), "bv": vec(ks[7]),
        "wp": mat(ks[8]), "bp": vec(ks[9]),
    }


def attention_block_reference(x_nchw, params):
    """Pure-JAX reference mirroring the PyTorch forward."""
    n, c, h, w = x_nchw.shape
    g = NUM_GROUPS
    # GroupNorm
    xg = x_nchw.reshape(n, g, c // g, h, w)
    mu = jnp.mean(xg, axis=(2, 3, 4), keepdims=True)
    var = jnp.var(xg, axis=(2, 3, 4), keepdims=True)
    xn = ((xg - mu) / jnp.sqrt(var + GN_EPS)).reshape(n, c, h, w)
    xn = (xn * params["gamma"].reshape(1, c, 1, 1)
          + params["beta"].reshape(1, c, 1, 1))

    # 1x1 convs
    def conv1x1(t, wmat, b):
        return jnp.einsum("oi,nihw->nohw", wmat, t) + b.reshape(1, c, 1, 1)

    q = conv1x1(xn, params["wq"], params["bq"]).reshape(n, c, -1)
    k = conv1x1(xn, params["wk"], params["bk"]).reshape(n, c, -1)
    v = conv1x1(xn, params["wv"], params["bv"]).reshape(n, c, -1)
    attn = jnp.einsum("ncp,ncq->npq", q, k) * (c ** -0.5)
    attn = jax.nn.softmax(attn, axis=-1)
    out = jnp.einsum("ncq,npq->ncp", v, attn).reshape(n, c, h, w)
    out = conv1x1(out, params["wp"], params["bp"])
    return out + x_nchw


if __name__ == "__main__":
    N, C, H, W = 2, 32, 16, 16   # channels must be divisible by 8 (GroupNorm)
    key = jax.random.PRNGKey(0)
    kx, kp = jax.random.split(key)
    x = jax.random.normal(kx, (N, C, H, W), jnp.float32)
    params = init_params(kp, C)

    out = jax.block_until_ready(attention_block_pallas(x, params))
    ref = attention_block_reference(x, params)

    assert out.shape == (N, C, H, W)
    # Small extra slack (2e-3 vs 1e-3) only for the EUP approx-reciprocal in
    # the softmax denominator; all matmuls/accumulation remain f32.
    max_err = float(jnp.max(jnp.abs(out - ref)))
    assert jnp.allclose(out, ref, rtol=2e-3, atol=2e-3), max_err

    print("KERNEL_OK")
</pallas_src>

<mosaic_0001>
module attributes {stable_mosaic.version = 11 : i64} {
  func.func @_attention_block_kernel(%arg0: i32, %arg1: memref<1x32x256xf32, #tpu.memory_space<vmem>>, %arg2: memref<32x32xf32, #tpu.memory_space<vmem>>, %arg3: memref<32x1xf32, #tpu.memory_space<vmem>>, %arg4: memref<32x1xf32, #tpu.memory_space<vmem>>, %arg5: memref<96x32xf32, #tpu.memory_space<vmem>>, %arg6: memref<96x1xf32, #tpu.memory_space<vmem>>, %arg7: memref<32x32xf32, #tpu.memory_space<vmem>>, %arg8: memref<32x1xf32, #tpu.memory_space<vmem>>, %arg9: memref<1x32x256xf32, #tpu.memory_space<vmem>>) attributes {dimension_semantics = [#tpu.dimension_semantics<parallel>], iteration_bounds = array<i64: 2>, scalar_prefetch = 0 : i64, scratch_operands = 0 : i64, tpu.core_type = #tpu.core_type<tc>, window_params = [{transform_indices = @transform_0, window_bounds = array<i64: 1, 32, 256>}, {pipeline_mode = #tpu.pipeline_mode<synchronous>, transform_indices = @transform_1, window_bounds = array<i64: 32, 32>}, {pipeline_mode = #tpu.pipeline_mode<synchronous>, transform_indices = @transform_2, window_bounds = array<i64: 32, 1>}, {pipeline_mode = #tpu.pipeline_mode<synchronous>, transform_indices = @transform_3, window_bounds = array<i64: 32, 1>}, {pipeline_mode = #tpu.pipeline_mode<synchronous>, transform_indices = @transform_4, window_bounds = array<i64: 96, 32>}, {pipeline_mode = #tpu.pipeline_mode<synchronous>, transform_indices = @transform_5, window_bounds = array<i64: 96, 1>}, {pipeline_mode = #tpu.pipeline_mode<synchronous>, transform_indices = @transform_6, window_bounds = array<i64: 32, 32>}, {pipeline_mode = #tpu.pipeline_mode<synchronous>, transform_indices = @transform_7, window_bounds = array<i64: 32, 1>}, {transform_indices = @transform_8, window_bounds = array<i64: 1, 32, 256>}]} {
    %c0 = arith.constant 0 : index
    %c0_0 = arith.constant 0 : index
    %c0_1 = arith.constant 0 : index
    %0 = vector.load %arg1[%c0, %c0_0, %c0_1] : memref<1x32x256xf32, #tpu.memory_space<vmem>>, vector<1x32x256xf32>
    %1 = vector.shape_cast %0 : vector<1x32x256xf32> to vector<32x256xf32>
    %cst = arith.constant dense<0.000000e+00> : vector<32xf32>
    %2 = vector.multi_reduction <add>, %1, %cst [1] : vector<32x256xf32> to vector<32xf32>
    %3 = vector.shape_cast %2 : vector<32xf32> to vector<32x1xf32>
    %4 = arith.mulf %1, %1 : vector<32x256xf32>
    %cst_2 = arith.constant dense<0.000000e+00> : vector<32xf32>
    %5 = vector.multi_reduction <add>, %4, %cst_2 [1] : vector<32x256xf32> to vector<32xf32>
    %6 = vector.shape_cast %5 : vector<32xf32> to vector<32x1xf32>
    %c0_3 = arith.constant 0 : index
    %c0_4 = arith.constant 0 : index
    %7 = vector.load %arg2[%c0_3, %c0_4] : memref<32x32xf32, #tpu.memory_space<vmem>>, vector<32x32xf32>
    %cst_5 = arith.constant dense<0.000000e+00> : vector<32x1xf32>
    %8 = tpu.matmul %7, %3, %cst_5 {dimension_numbers = #tpu.dot_dimension_numbers<[1], [0], [0], [1], [0, 0, 1, 1], [], []>} : vector<32x32xf32>, vector<32x1xf32>, vector<32x1xf32> -> vector<32x1xf32>
    %c0_6 = arith.constant 0 : index
    %c0_7 = arith.constant 0 : index
    %9 = vector.load %arg2[%c0_6, %c0_7] : memref<32x32xf32, #tpu.memory_space<vmem>>, vector<32x32xf32>
    %cst_8 = arith.constant dense<0.000000e+00> : vector<32x1xf32>
    %10 = tpu.matmul %9, %6, %cst_8 {dimension_numbers = #tpu.dot_dimension_numbers<[1], [0], [0], [1], [0, 0, 1, 1], [], []>} : vector<32x32xf32>, vector<32x1xf32>, vector<32x1xf32> -> vector<32x1xf32>
    %11 = arith.mulf %8, %8 : vector<32x1xf32>
    %12 = arith.subf %10, %11 : vector<32x1xf32>
    %cst_9 = arith.constant 9.99999974E-6 : f32
    %13 = vector.broadcast %cst_9 : f32 to vector<32x1xf32>
    %14 = arith.addf %12, %13 : vector<32x1xf32>
    %15 = math.rsqrt %14 : vector<32x1xf32>
    %16 = vector.broadcast %8 : vector<32x1xf32> to vector<32x256xf32>
    %17 = arith.subf %1, %16 : vector<32x256xf32>
    %c0_10 = arith.constant 0 : index
    %c0_11 = arith.constant 0 : index
    %18 = vector.load %arg3[%c0_10, %c0_11] : memref<32x1xf32, #tpu.memory_space<vmem>>, vector<32x1xf32>
    %19 = arith.mulf %15, %18 : vector<32x1xf32>
    %20 = vector.broadcast %19 : vector<32x1xf32> to vector<32x256xf32>
    %21 = arith.mulf %17, %20 : vector<32x256xf32>
    %c0_12 = arith.constant 0 : index
    %c0_13 = arith.constant 0 : index
    %22 = vector.load %arg4[%c0_12, %c0_13] : memref<32x1xf32, #tpu.memory_space<vmem>>, vector<32x1xf32>
    %23 = vector.broadcast %22 : vector<32x1xf32> to vector<32x256xf32>
    %24 = arith.addf %21, %23 : vector<32x256xf32>
    %c0_14 = arith.constant 0 : index
    %c0_15 = arith.constant 0 : index
    %25 = vector.load %arg5[%c0_14, %c0_15] : memref<96x32xf32, #tpu.memory_space<vmem>>, vector<96x32xf32>
    %cst_16 = arith.constant dense<0.000000e+00> : vector<96x256xf32>
    %26 = tpu.matmul %25, %24, %cst_16 {dimension_numbers = #tpu.dot_dimension_numbers<[1], [0], [0], [1], [0, 0, 1, 1], [], []>} : vector<96x32xf32>, vector<32x256xf32>, vector<96x256xf32> -> vector<96x256xf32>
    %c0_17 = arith.constant 0 : index
    %c0_18 = arith.constant 0 : index
    %27 = vector.load %arg6[%c0_17, %c0_18] : memref<96x1xf32, #tpu.memory_space<vmem>>, vector<96x1xf32>
    %28 = vector.broadcast %27 : vector<96x1xf32> to vector<96x256xf32>
    %29 = arith.addf %26, %28 : vector<96x256xf32>
    %30 = vector.extract_strided_slice %29 {offsets = [0, 0], sizes = [32, 256], strides = [1, 1]} : vector<96x256xf32> to vector<32x256xf32>
    %31 = vector.extract_strided_slice %29 {offsets = [32, 0], sizes = [32, 256], strides = [1, 1]} : vector<96x256xf32> to vector<32x256xf32>
    %32 = vector.extract_strided_slice %29 {offsets = [64, 0], sizes = [32, 256], strides = [1, 1]} : vector<96x256xf32> to vector<32x256xf32>
    %33 = tpu.transpose %30, [1, 0] : vector<32x256xf32> -> vector<256x32xf32>
    %cst_19 = arith.constant dense<0.000000e+00> : vector<256x256xf32>
    %34 = tpu.matmul %33, %31, %cst_19 {dimension_numbers = #tpu.dot_dimension_numbers<[1], [0], [0], [1], [0, 0, 1, 1], [], []>} : vector<256x32xf32>, vector<32x256xf32>, vector<256x256xf32> -> vector<256x256xf32>
    %cst_20 = arith.constant dense<0xFF800000> : vector<256xf32>
    %35 = vector.multi_reduction <maximumf>, %34, %cst_20 [1] : vector<256x256xf32> to vector<256xf32>
    %36 = vector.shape_cast %35 : vector<256xf32> to vector<256x1xf32>
    %37 = vector.broadcast %36 : vector<256x1xf32> to vector<256x256xf32>
    %38 = arith.subf %34, %37 : vector<256x256xf32>
    %39 = math.exp %38 : vector<256x256xf32>
    %cst_21 = arith.constant dense<0.000000e+00> : vector<256xf32>
    %40 = vector.multi_reduction <add>, %39, %cst_21 [1] : vector<256x256xf32> to vector<256xf32>
    %41 = vector.shape_cast %40 : vector<256xf32> to vector<256x1xf32>
    %42 = tpu.reciprocal %41 {approx = true} : vector<256x1xf32> -> vector<256x1xf32>
    %43 = vector.broadcast %42 : vector<256x1xf32> to vector<256x256xf32>
    %44 = arith.mulf %39, %43 : vector<256x256xf32>
    %cst_22 = arith.constant dense<0.000000e+00> : vector<32x256xf32>
    %45 = tpu.matmul %32, %44, %cst_22 {dimension_numbers = #tpu.dot_dimension_numbers<[1], [1], [0], [0], [0, 0, 1, 0], [], []>} : vector<32x256xf32>, vector<256x256xf32>, vector<32x256xf32> -> vector<32x256xf32>
    %c0_23 = arith.constant 0 : index
    %c0_24 = arith.constant 0 : index
    %46 = vector.load %arg7[%c0_23, %c0_24] : memref<32x32xf32, #tpu.memory_space<vmem>>, vector<32x32xf32>
    %cst_25 = arith.constant dense<0.000000e+00> : vector<32x256xf32>
    %47 = tpu.matmul %46, %45, %cst_25 {dimension_numbers = #tpu.dot_dimension_numbers<[1], [0], [0], [1], [0, 0, 1, 1], [], []>} : vector<32x32xf32>, vector<32x256xf32>, vector<32x256xf32> -> vector<32x256xf32>
    %c0_26 = arith.constant 0 : index
    %c0_27 = arith.constant 0 : index
    %48 = vector.load %arg8[%c0_26, %c0_27] : memref<32x1xf32, #tpu.memory_space<vmem>>, vector<32x1xf32>
    %49 = vector.broadcast %48 : vector<32x1xf32> to vector<32x256xf32>
    %50 = arith.addf %47, %49 : vector<32x256xf32>
    %51 = arith.addf %50, %1 : vector<32x256xf32>
    %c0_28 = arith.constant 0 : index
    %c0_29 = arith.constant 0 : index
    %c0_30 = arith.constant 0 : index
    %52 = vector.load %arg9[%c0_28, %c0_29, %c0_30] : memref<1x32x256xf32, #tpu.memory_space<vmem>>, vector<1x32x256xf32>
    %53 = vector.shape_cast %52 : vector<1x32x256xf32> to vector<32x256xf32>
    %54 = vector.shape_cast %51 : vector<32x256xf32> to vector<1x32x256xf32>
    tpu.vector_store %arg9[%c0_28, %c0_29, %c0_30], %54 {strides = array<i32>} : memref<1x32x256xf32, #tpu.memory_space<vmem>>, vector<1x32x256xf32>,
    return
  }
  func.func @transform_0(%arg0: i32) -> (i32, i32, i32) {
    %c0_i32 = arith.constant 0 : i32
    %c0_i32_0 = arith.constant 0 : i32
    %c0_i32_1 = arith.constant 0 : i32
    return %arg0, %c0_i32, %c0_i32_0 : i32, i32, i32
  }
  func.func @transform_1(%arg0: i32) -> (i32, i32) {
    %c0_i32 = arith.constant 0 : i32
    %c0_i32_0 = arith.constant 0 : i32
    %c0_i32_1 = arith.constant 0 : i32
    return %c0_i32, %c0_i32_0 : i32, i32
  }
  func.func @transform_2(%arg0: i32) -> (i32, i32) {
    %c0_i32 = arith.constant 0 : i32
    %c0_i32_0 = arith.constant 0 : i32
    %c0_i32_1 = arith.constant 0 : i32
    return %c0_i32, %c0_i32_0 : i32, i32
  }
  func.func @transform_3(%arg0: i32) -> (i32, i32) {
    %c0_i32 = arith.constant 0 : i32
    %c0_i32_0 = arith.constant 0 : i32
    %c0_i32_1 = arith.constant 0 : i32
    return %c0_i32, %c0_i32_0 : i32, i32
  }
  func.func @transform_4(%arg0: i32) -> (i32, i32) {
    %c0_i32 = arith.constant 0 : i32
    %c0_i32_0 = arith.constant 0 : i32
    %c0_i32_1 = arith.constant 0 : i32
    return %c0_i32, %c0_i32_0 : i32, i32
  }
  func.func @transform_5(%arg0: i32) -> (i32, i32) {
    %c0_i32 = arith.constant 0 : i32
    %c0_i32_0 = arith.constant 0 : i32
    %c0_i32_1 = arith.constant 0 : i32
    return %c0_i32, %c0_i32_0 : i32, i32
  }
  func.func @transform_6(%arg0: i32) -> (i32, i32) {
    %c0_i32 = arith.constant 0 : i32
    %c0_i32_0 = arith.constant 0 : i32
    %c0_i32_1 = arith.constant 0 : i32
    return %c0_i32, %c0_i32_0 : i32, i32
  }
  func.func @transform_7(%arg0: i32) -> (i32, i32) {
    %c0_i32 = arith.constant 0 : i32
    %c0_i32_0 = arith.constant 0 : i32
    %c0_i32_1 = arith.constant 0 : i32
    return %c0_i32, %c0_i32_0 : i32, i32
  }
  func.func @transform_8(%arg0: i32) -> (i32, i32, i32) {
    %c0_i32 = arith.constant 0 : i32
    %c0_i32_0 = arith.constant 0 : i32
    %c0_i32_1 = arith.constant 0 : i32
    return %arg0, %c0_i32, %c0_i32_0 : i32, i32, i32
  }
}

</mosaic_0001>

<bundles_post_ra>
// kernel: tpu_custom_call.1
= control target key start
LH: loop header
LB: loop body
LE: loop exit
PB: predicated region body
PF: predicated region fallthrough
CT: control target
= control target key end

     0   :  { %13 = vsyncpa [#allocation3], 0  ;;  %s3673_s0 = inlined_call_operand.vmem [shape: f32[2,32,256], index: 0, kind: input, shape index: {}]   ;;  %s3674_s1 = inlined_call_operand.vmem [shape: f32[32,32], index: 1, kind: input, shape index: {}]   ;;  %s3675_s2 = inlined_call_operand.vmem [shape: f32[32,1], index: 2, kind: input, shape index: {}]   ;;  %s3676_s3 = inlined_call_operand.vmem [shape: f32[32,1], index: 3, kind: input, shape index: {}]   ;;  %s3677_s4 = inlined_call_operand.vmem [shape: f32[96,32], index: 4, kind: input, shape index: {}]   ;;  %s3678_s5 = inlined_call_operand.vmem [shape: f32[96,1], index: 5, kind: input, shape index: {}]   ;;  %s3679_s6 = inlined_call_operand.vmem [shape: f32[32,32], index: 6, kind: input, shape index: {}]   ;;  %s3680_s7 = inlined_call_operand.vmem [shape: f32[32,1], index: 7, kind: input, shape index: {}]   ;;  %s3681_s8 = inlined_call_operand.hbm [shape: f32[2,32,256], index: 8, kind: output, shape index: {}]  }
   0x1   :  { %15 = vsyncpa [#allocation3 + $0x1], 0  ;;  %s2692_s27 = smov 0   ;;  %s2694_s28 = smov 0  }
   0x2   :  { %s2696_s29 = smov 0   ;;  %s2698_s30 = smov 0  }
   0x3 LB: > { %s2713_s9 = sadd.s32 4294967295, %s2640_s30   ;;  %s2107_s10 = sadd.s32 4294967294, %s2640_s30   ;;  %s2640_s30 = sphi %s2698_s30, %s3777_s30   ;;  %s2636_s29 = sphi %s2696_s29, %s3776_s29   ;;  %s2632_s28 = sphi %s2694_s28, %s3775_s28   ;;  %s2628_s27 = sphi %s2692_s27, %s3774_s27  }
   0x4   : > { %s2717_s11 = sadd.s32 1, %s2640_s30   ;;  %s201_s12 = sadd.s32 1, %s2636_s29 }
   0x5   : > { %s198_s13 = ssub.s32 %s2640_s30, %s2717_s11  ;;  %p211_p0 = scmp.ne.s32.totalorder %s2636_s29, %s2632_s28 }
   0x6   : > { %p199_p1 = scmp.eq.s32.totalorder %s198_s13, 0  ;;  %p212_p2 = scmp.eq.s32.totalorder %s2713_s9, 1 }
   0x7   : > { %p217_p3 = scmp.ne.s32.totalorder %s2632_s28, %s2628_s27  ;;  %p218_p4 = scmp.eq.s32.totalorder %s2107_s10, 1 }
   0x8   : > { %s2728_s14 = scalar_select %p199_p1, %s2636_s29, %s201_s12  }
   0x9   : > { %p2730_p5 = por %p212_p2, %p211_p0  ;;  %p2734_p6 = por %p218_p4, %p217_p3 }
   0xa   : > { %p2110_p7 = scmp.ge.s32.totalorder %s2640_s30, 1  ;;  %p265_p8 = scmp.lt.s32.totalorder %s2640_s30, 3 }
   0xc   : > { %p266_p9 = pnand %p2110_p7, %p265_p8 }
   0xe   : > { %269 = sbr.rel (%p266_p9) target bundleno = 2155 (0x86b), region = 52 }
  0x15   : > { %p299_p10 = scmp.lt.s32.totalorder %s2713_s9, 1  ;;  %v344_v24 = vld [vmem:[%s3674_s1] sm:$0xff]  ;;  %vm348_vm0 = vcmask 261120   ;;  %v2642_v26 = vmov 0   ;;  %v612_v27 = vld [vmem:[%s3676_s3 + $0x8] sm:$0xff]  ;;  %v346_v41 = vld [vmem:[%s3674_s1 + $0x10] sm:$0xff] }
  0x16   : > { %2201 = vmatprep.mubr.msk.f32.mxu0 %vm348_vm0, %v344_v24  ;;  %2215 = vmatprep.mubr.msk.f32.mxu1 %vm348_vm0, %v344_v24  ;;  %v611_v25 = vld [vmem:[%s3676_s3] sm:$0xff]  ;;  %v345_v39 = vld [vmem:[%s3674_s1 + $0x8] sm:$0xff]  ;;  %v347_v42 = vld [vmem:[%s3674_s1 + $0x18] sm:$0xff]  ;;  %s296_s26 = sand.u32 1, %s2632_s28   ;;  %s2176_s13 = sshll.u32 %s2713_s9, 10 }
  0x17   : > { %s300_s17 = scalar_select %p299_p10, %s2713_s9, 1  ;;  %2368 = vset.pattern.permute.xlu1 %v2642_v26  ;;  %2369 = vset.pattern.permute.xlu0 %v2642_v26  ;;  %v576_v63 = vld [vmem:[%s3675_s2 + $0x8] sm:$0xff]  ;;  %v3682_v26 = vmov 0.0  }
  0x18   : > { %v660_v24 = vld [vmem:[%s3678_s5 + $0x28] sm:$0xff]  ;;  %s2111_s10 = sshll.u32 %s296_s26, 6  ;;  %s3623_s20 = scalar_lea.hbm %s3681_s8, %s2176_s13 }
  0x19   : > { %s2175_s18 = sshll.u32 %s300_s17, 6  ;;  %s3605_s12 = scalar_lea.vmem [#allocation2], %s2111_s10 }
  0x1a   : > { %s2745_s21 = scalar_lea.vmem %s3673_s0, %s2175_s18  ;;  %s2045_s17 = sshll.u32 %s3605_s12, 4  ;;  %s3625_s17 = int_to_ptr.vmem [resolvable:$true] %s2045_s17 }
  0x1b   : > { %v2748_v0 = vld [vmem:[%s2745_s21 + $0x30] sm:$0xff]  ;;  %v2751_v1 = vld [vmem:[%s2745_s21 + $0x38] sm:$0xff]  ;;  %v2754_v2 = vld [vmem:[%s2745_s21] sm:$0xff]  ;;  %s3632_s9 = scalar_lea.sflag [#allocation3], %s296_s26  ;;  %s2578_s22 = scalar_lea.vmem %s3625_s17, 1024 }
  0x1c   : > { %v321_v3 = vadd.f32 %v2751_v1, %v2748_v0  ;;  %v2759_v4 = vld [vmem:[%s2745_s21 + $0x8] sm:$0xff]  ;;  %v324_v5 = vmul.f32 %v2754_v2, %v2754_v2  ;;  %v2764_v6 = vld [vmem:[%s2745_s21 + $0x10] sm:$0xff]  ;;  %v2767_v7 = vld [vmem:[%s2745_s21 + $0x18] sm:$0xff]  ;;  %v330_v17 = vmul.f32 %v2748_v0, %v2748_v0  ;;  %v331_v18 = vmul.f32 %v2751_v1, %v2751_v1  ;;  %p2579_p11 = scmp.ne.s32.totalorder %s3625_s17, %s2578_s22  ;;  %s2644_s23 = smov [#allocation2]  }
  0x1d   : > { %v312_v8 = vadd.f32 %v2759_v4, %v2754_v2  ;;  %v325_v9 = vmul.f32 %v2759_v4, %v2759_v4  ;;  %v326_v10 = vmul.f32 %v2764_v6, %v2764_v6  ;;  %v327_v11 = vmul.f32 %v2767_v7, %v2767_v7  ;;  %v2780_v14 = vld [vmem:[%s2745_s21 + $0x20] sm:$0xff]  ;;  %v2783_v15 = vld [vmem:[%s2745_s21 + $0x28] sm:$0xff]  ;;  %s2582_s24 = sshll.u32 %s2644_s23, 4  ;;  %s2583_s24 = int_to_ptr.vmem [resolvable:$false] %s2582_s24 }
  0x1e   : > { %322 = vadd.xlane.f32.xlu1 %v321_v3  ;;  %v315_v13 = vadd.f32 %v2767_v7, %v2764_v6  ;;  %v318_v19 = vadd.f32 %v2783_v15, %v2780_v14  ;;  %v328_v20 = vmul.f32 %v2780_v14, %v2780_v14  ;;  %v329_v21 = vmul.f32 %v2783_v15, %v2783_v15  ;;  %p2580_p12 = pnand %p2579_p11, %p2730_p5  ;;  %s2584_s25 = scalar_lea.vmem %s2583_s24, 2048 }
  0x1f   : > { %313 = vadd.xlane.f32.xlu0 %v312_v8  ;;  %v332_v12 = vadd.f32 %v325_v9, %v324_v5  ;;  %v335_v16 = vadd.f32 %v327_v11, %v326_v10  ;;  %v341_v22 = vadd.f32 %v331_v18, %v330_v17  ;;  %v575_v9 = vld [vmem:[%s3675_s2] sm:$0xff]  ;;  %v578_v10 = vld [vmem:[%s3675_s2 + $0x18] sm:$0xff]  ;;  %p2585_p0 = scmp.lt.s32.totalorder %s3625_s17, %s2583_s24  ;;  %p2586_p1 = scmp.lt.s32.totalorder %s2584_s25, %s2578_s22 }
  0x20   : > { %v338_v23 = vadd.f32 %v329_v21, %v328_v20  ;;  %v656_v20 = vld [vmem:[%s3678_s5 + $0x8] sm:$0xff]  ;;  %v613_v21 = vld [vmem:[%s3676_s3 + $0x10] sm:$0xff]  ;;  %p2581_p13 = pneg %p2580_p12 }
  0x21   : > { %p2587_p2 = por %p2586_p1, %p2585_p0 }
  0x22   : > { %333 = vadd.xlane.f32.xlu1 %v332_v12  ;;  %v577_v12 = vld [vmem:[%s3675_s2 + $0x10] sm:$0xff] }
  0x23   : > { %316 = vadd.xlane.f32.xlu0 %v315_v13  ;;  %p2588_p3 = pnand %p2587_p2, %p2581_p13 }
  0x26   : > { %336 = vadd.xlane.f32.xlu1 %v335_v16 }
  0x27   : > { %319 = vadd.xlane.f32.xlu0 %v318_v19  ;;  %v614_v19 = vld [vmem:[%s3676_s3 + $0x18] sm:$0xff] }
  0x2a   : > { %342 = vadd.xlane.f32.xlu1 %v341_v22  ;;  %v658_v22 = vld [vmem:[%s3678_s5 + $0x18] sm:$0xff] }
  0x2b   : > { %339 = vadd.xlane.f32.xlu0 %v338_v23  ;;  %v655_v23 = vld [vmem:[%s3678_s5] sm:$0xff] }
  0x3b   : > { %617 = vperm.xlu1 %2368, %v611_v25   ;;  %v657_v25 = vld [vmem:[%s3678_s5 + $0x10] sm:$0xff] }
  0x3f   : > { %622 = vperm.xlu1 %2368, %v612_v27   ;;  %v662_v27 = vld [vmem:[%s3678_s5 + $0x38] sm:$0xff] }
  0xab   : > { %v323_v28 = vpop.xlane.xlu1 %322 }
  0xac   : > { %v314_v29 = vpop.xlane.xlu0 %313 }
  0xaf   : > { %v334_v30 = vpop.xlane.xlu1 %333 }
  0xb0   : > { %v317_v31 = vpop.xlane.xlu0 %316 }
  0xb1   : > { %v2221_v32 = vpack.c.bf16 %v317_v31, %v314_v29  ;;  %v661_v29 = vld [vmem:[%s3678_s5 + $0x30] sm:$0xff] }
  0xb3   : > { %2222 = vmatprep.subr.bf16.mxu0 %v2221_v32  ;;  %v337_v33 = vpop.xlane.xlu1 %336 }
  0xb4   : > { %2224 = vmatpush3.bf16.msra.mxu0 %v2221_v32  ;;  %v320_v34 = vpop.xlane.xlu0 %319  ;;  %v2229_v35 = vpack.c.bf16 %v337_v33, %v334_v30 }
  0xb5   : > { %v2225_v36 = vpack.c.bf16 %v323_v28, %v320_v34  ;;  %v659_v28 = vld [vmem:[%s3678_s5 + $0x20] sm:$0xff] }
  0xb6   : > { %2230 = vmatprep.subr.bf16.mxu1 %v2229_v35 }
  0xb7   : > { %2226 = vmatprep.subr.bf16.mxu0 %v2225_v36  ;;  %2232 = vmatpush3.bf16.msra.mxu1 %v2229_v35  ;;  %v343_v37 = vpop.xlane.xlu1 %342 }
  0xb8   : > { %2228 = vmatpush3.bf16.msra.mxu0 %v2225_v36  ;;  %v340_v38 = vpop.xlane.xlu0 %339 }
  0xb9   : > { %v2233_v40 = vpack.c.bf16 %v343_v37, %v340_v38 }
  0xbb   : > { %2202 = vmatmul.mubr.msk.f32.vlgmr.msra.gmra.mrb[0].mxu0 %vm348_vm0, %v345_v39  ;;  %2234 = vmatprep.subr.bf16.mxu1 %v2233_v40  ;;  %v618_v30 = vpop.permute.xlu1 %617 }
  0xbc   : > { %2236 = vmatpush3.bf16.msra.mxu1 %v2233_v40  ;;  %2204 = vmatprep.mubr.msk.f32.mxu0 %vm348_vm0, %v346_v41 }
  0xbf   : > { %2205 = vmatmul.mubr.msk.f32.gmra.mrb[2].mxu0 %vm348_vm0, %v347_v42  ;;  %2216 = vmatmul.mubr.msk.f32.vlgmr.msra.gmra.mrb[0].mxu1 %vm348_vm0, %v345_v39  ;;  %v623_v31 = vpop.permute.xlu1 %622 }
  0xc0   : > { %2218 = vmatprep.mubr.msk.f32.mxu1 %vm348_vm0, %v346_v41  ;;  %827 = vmatprep.mubr.f32.mxu0 %v3682_v26 }
  0xc3   : > { %2219 = vmatmul.mubr.msk.f32.gmra.mrb[2].mxu1 %vm348_vm0, %v347_v42 }
  0xc4   : > { %1124 = vmatprep.mubr.f32.mxu1 %v3682_v26 }
 0x18e   : > { %v2203_v43 = vpop.f32.mrb[0].mxu0 }
 0x18f   : > { %v532_v44 = vmul.f32 %v2203_v43, %v2203_v43  ;;  %554 = vperm.xlu1 %2368, %v2203_v43   ;;  %v427_v45 = vpop.f32.mrb[1].mxu0 }
 0x190   : > { %v531_v46 = vmul.f32 %v427_v45, %v427_v45  ;;  %549 = vperm.xlu0 %2369, %v427_v45  }
 0x192   : > { %v2206_v47 = vpop.f32.mrb[2].mxu0  ;;  %v2217_v48 = vpop.f32.mrb[0].mxu1 }
 0x193   : > { %v534_v49 = vmul.f32 %v2206_v47, %v2206_v47  ;;  %v536_v50 = vsub.f32 %v2217_v48, %v532_v44  ;;  %564 = vperm.xlu1 %2368, %v2206_v47   ;;  %v512_v51 = vpop.f32.mrb[1].mxu1  ;;  %v437_v52 = vpop.f32.mrb[3].mxu0 }
 0x194   : > { %v535_v53 = vsub.f32 %v512_v51, %v531_v46  ;;  %v533_v54 = vmul.f32 %v437_v52, %v437_v52 }
 0x195   : > { %v540_v55 = vadd.f32 1e-05, %v536_v50 }
 0x196   : > { %v539_v56 = vadd.f32 1e-05, %v535_v53  ;;  %v2220_v57 = vpop.f32.mrb[2].mxu1 }
 0x197   : > { %2370 = vrsqrt.f32 %v540_v55  ;;  %v538_v58 = vsub.f32 %v2220_v57, %v534_v49  ;;  %559 = vperm.xlu1 %2368, %v437_v52   ;;  %v522_v59 = vpop.f32.mrb[3].mxu1 }
 0x198   : > { %v537_v60 = vsub.f32 %v522_v59, %v533_v54  ;;  %2372 = vrsqrt.f32 %v539_v56 }
 0x199   : > { %v542_v61 = vadd.f32 1e-05, %v538_v58 }
 0x19a   : > { %v541_v62 = vadd.f32 1e-05, %v537_v60 }
 0x19b   : > { %2374 = vrsqrt.f32 %v542_v61 }
 0x19c   : > { %2376 = vrsqrt.f32 %v541_v62 }
 0x1a1   : > { %v2371_v3 = vpop.eup %2370 }
 0x1a2   : > { %v580_v5 = vmul.f32 %v2371_v3, %v576_v63  ;;  %v2373_v8 = vpop.eup %2372  ;;  %v645_v3 = vld [vmem:[%s3677_s4 + $0x10] sm:$0xff] }
 0x1a3   : > { %v579_v16 = vmul.f32 %v2373_v8, %v575_v9  ;;  %v647_v8 = vld [vmem:[%s3677_s4 + $0x20] sm:$0xff]  ;;  %v648_v9 = vld [vmem:[%s3677_s4 + $0x28] sm:$0xff] }
 0x1a4   : > { %590 = vperm.xlu1 %2368, %v580_v5   ;;  %v646_v5 = vld [vmem:[%s3677_s4 + $0x18] sm:$0xff] }
 0x1a5   : > { %v2375_v11 = vpop.eup %2374 }
 0x1a6   : > { %v2377_v13 = vpop.eup %2376  ;;  %v582_v17 = vmul.f32 %v2375_v11, %v578_v10  ;;  %v649_v10 = vld [vmem:[%s3677_s4 + $0x30] sm:$0xff]  ;;  %v650_v11 = vld [vmem:[%s3677_s4 + $0x38] sm:$0xff] }
 0x1a7   : > { %v581_v18 = vmul.f32 %v2377_v13, %v577_v12 }
 0x1a8   : > { %585 = vperm.xlu1 %2368, %v579_v16   ;;  %600 = vperm.xlu0 %2369, %v582_v17  }
 0x1ac   : > { %632 = vperm.xlu0 %2369, %v614_v19   ;;  %595 = vperm.xlu1 %2368, %v581_v18  }
 0x1b0   : > { %674 = vperm.xlu0 %2369, %v656_v20   ;;  %627 = vperm.xlu1 %2368, %v613_v21  }
 0x1b4   : > { %684 = vperm.xlu0 %2369, %v658_v22   ;;  %669 = vperm.xlu1 %2368, %v655_v23  }
 0x1b8   : > { %694 = vperm.xlu0 %2369, %v660_v24   ;;  %679 = vperm.xlu1 %2368, %v657_v25  }
 0x1bc   : > { %704 = vperm.xlu0 %2369, %v662_v27   ;;  %689 = vperm.xlu1 %2368, %v659_v28  }
 0x1c0   : > { %699 = vperm.xlu1 %2368, %v661_v29  }
 0x20e   : > { %v555_v32 = vpop.permute.xlu1 %554 }
 0x20f   : > { %v550_v35 = vpop.permute.xlu0 %549  ;;  %v569_v37 = vsub.f32 %v2764_v6, %v555_v32  ;;  %v570_v38 = vsub.f32 %v2767_v7, %v555_v32 }
 0x210   : > { %v567_v39 = vsub.f32 %v2754_v2, %v550_v35  ;;  %v568_v40 = vsub.f32 %v2759_v4, %v550_v35 }
 0x212   : > { %v565_v33 = vpop.permute.xlu1 %564 }
 0x213   : > { %v573_v52 = vsub.f32 %v2748_v0, %v565_v33  ;;  %v574_v6 = vsub.f32 %v2751_v1, %v565_v33 }
 0x216   : > { %v560_v34 = vpop.permute.xlu1 %559 }
 0x217   : > { %v571_v7 = vsub.f32 %v2780_v14, %v560_v34  ;;  %v572_v2 = vsub.f32 %v2783_v15, %v560_v34  ;;  %v643_v14 = vld [vmem:[%s3677_s4] sm:$0xff]  ;;  %v644_v15 = vld [vmem:[%s3677_s4 + $0x8] sm:$0xff] }
 0x223   : > { %v591_v36 = vpop.permute.xlu1 %590 }
 0x224   : > { %v605_v41 = vmul.f32 %v591_v36, %v569_v37  ;;  %v606_v42 = vmul.f32 %v591_v36, %v570_v38 }
 0x226   : > { %v637_v49 = vadd.f32 %v623_v31, %v605_v41  ;;  %v638_v50 = vadd.f32 %v623_v31, %v606_v42 }
 0x227   : > { %v586_v43 = vpop.permute.xlu1 %585  ;;  %v601_v44 = vpop.permute.xlu0 %600 }
 0x228   : > { %v603_v45 = vmul.f32 %v586_v43, %v567_v39  ;;  %v604_v46 = vmul.f32 %v586_v43, %v568_v40  ;;  %v609_v55 = vmul.f32 %v601_v44, %v573_v52  ;;  %v610_v56 = vmul.f32 %v601_v44, %v574_v6 }
 0x22a   : > { %v635_v47 = vadd.f32 %v618_v30, %v603_v45  ;;  %v636_v48 = vadd.f32 %v618_v30, %v604_v46 }
 0x22b   : > { %v596_v51 = vpop.permute.xlu1 %595  ;;  %v633_v4 = vpop.permute.xlu0 %632 }
 0x22c   : > { %v2237_v53 = vpack.c.bf16 %v638_v50, %v636_v48  ;;  %v2239_v54 = vpack.c.bf16 %v637_v49, %v635_v47  ;;  %v607_v57 = vmul.f32 %v596_v51, %v571_v7  ;;  %v608_v58 = vmul.f32 %v596_v51, %v572_v2 }
 0x22d   : > { %v641_v60 = vadd.f32 %v633_v4, %v609_v55  ;;  %v642_v61 = vadd.f32 %v633_v4, %v610_v56 }
 0x22e   : > { %2238 = vmatprep.subr.bf16.mxu0 %v2237_v53 }
 0x22f   : > { %v628_v59 = vpop.permute.xlu1 %627  ;;  %2240 = vmatpush1.bf16.msra.mxu0 %v2239_v54  ;;  %v675_v19 = vpop.permute.xlu0 %674 }
 0x230   : > { %v639_v62 = vadd.f32 %v628_v59, %v607_v57  ;;  %v640_v63 = vadd.f32 %v628_v59, %v608_v58 }
 0x232   : > { %v2243_v0 = vpack.c.bf16 %v641_v60, %v639_v62  ;;  %v2241_v1 = vpack.c.bf16 %v642_v61, %v640_v63 }
 0x233   : > { %v670_v12 = vpop.permute.xlu1 %669  ;;  %v685_v30 = vpop.permute.xlu0 %684 }
 0x234   : > { %2242 = vmatprep.subr.bf16.mxu0 %v2241_v1 }
 0x235   : > { %2244 = vmatpush1.bf16.msra.mxu0 %v2243_v0 }
 0x237   : > { %v680_v24 = vpop.permute.xlu1 %679  ;;  %v695_v37 = vpop.permute.xlu0 %694 }
 0x238   : > { %2122 = vmatmul.mubr.msk.f32.vlgmr.msra.gmra.mrb[4].mxu0 %vm348_vm0, %v643_v14 }
 0x239   : > { %833 = vmatprep.mubr.f32.mxu0 %v3682_v26 }
 0x23b   : > { %v690_v38 = vpop.permute.xlu1 %689  ;;  %v705_v49 = vpop.permute.xlu0 %704 }
 0x23c   : > { %2123 = vmatmul.mubr.msk.f32.gmra.mrb[6].mxu0 %vm348_vm0, %v644_v15 }
 0x23d   : > { %839 = vmatprep.mubr.f32.mxu0 %v3682_v26 }
 0x23f   : > { %v700_v50 = vpop.permute.xlu1 %699 }
 0x240   : > { %2124 = vmatmul.mubr.msk.f32.gmra.mrb[8].mxu0 %vm348_vm0, %v645_v3 }
 0x241   : > { %845 = vmatprep.mubr.f32.mxu0 %v3682_v26 }
 0x244   : > { %2125 = vmatmul.mubr.msk.f32.gmra.mrb[10].mxu0 %vm348_vm0, %v646_v5 }
 0x245   : > { %851 = vmatprep.mubr.f32.mxu0 %v3682_v26 }
 0x248   : > { %2126 = vmatmul.mubr.msk.f32.gmra.mrb[12].mxu0 %vm348_vm0, %v647_v8 }
 0x249   : > { %857 = vmatprep.mubr.f32.mxu0 %v3682_v26 }
 0x24c   : > { %2127 = vmatmul.mubr.msk.f32.gmra.mrb[14].mxu0 %vm348_vm0, %v648_v9 }
 0x24d   : > { %863 = vmatprep.mubr.f32.mxu0 %v3682_v26 }
 0x250   : > { %2128 = vmatmul.mubr.msk.f32.gmra.mrb[16].mxu0 %vm348_vm0, %v649_v10 }
 0x251   : > { %869 = vmatprep.mubr.f32.mxu0 %v3682_v26 }
 0x254   : > { %2129 = vmatmul.mubr.msk.f32.gmra.mrb[18].mxu0 %vm348_vm0, %v650_v11 }
 0x255   : > { %875 = vmatprep.mubr.f32.mxu0 %v3682_v26 }
 0x30b   : > { %v829_v13 = vpop.f32.mrb[4].mxu0 }
 0x30c   : > { %v830_v16 = vadd.f32 %v829_v13, %v670_v12  ;;  %v831_v17 = vpop.f32.mrb[5].mxu0 }
 0x30d   : > { %v832_v18 = vadd.f32 %v831_v17, %v670_v12 }
 0x30e   : > { %900 = vxpose.xlu1.b32.start [1/4] (short) %v830_v16, 128 }
 0x30f   : > { %v835_v20 = vpop.f32.mrb[6].mxu0  ;;  %932 = vxpose.xlu0.b32.start [1/4] (short) %v832_v18, 128 }
 0x310   : > { %v836_v21 = vadd.f32 %v835_v20, %v675_v19  ;;  %v837_v22 = vpop.f32.mrb[7].mxu0 }
 0x311   : > { %v838_v23 = vadd.f32 %v837_v22, %v675_v19 }
 0x312   : > { %901 = vxpose.xlu1.b32.cont [2/4] (short) %v836_v21, 128 }
 0x313   : > { %v841_v25 = vpop.f32.mrb[8].mxu0  ;;  %933 = vxpose.xlu0.b32.cont [2/4] (short) %v838_v23, 128 }
 0x314   : > { %v842_v27 = vadd.f32 %v841_v25, %v680_v24  ;;  %v843_v28 = vpop.f32.mrb[9].mxu0 }
 0x315   : > { %v844_v29 = vadd.f32 %v843_v28, %v680_v24 }
 0x316   : > { %902 = vxpose.xlu1.b32.cont [3/4] (short) %v842_v27, 128 }
 0x317   : > { %v847_v31 = vpop.f32.mrb[10].mxu0  ;;  %934 = vxpose.xlu0.b32.cont [3/4] (short) %v844_v29, 128 }
 0x318   : > { %v848_v32 = vadd.f32 %v847_v31, %v685_v30  ;;  %v849_v33 = vpop.f32.mrb[11].mxu0 }
 0x319   : > { %v850_v34 = vadd.f32 %v849_v33, %v685_v30 }
 0x31a   : > { %903 = vxpose.xlu1.b32.end [4/4] (short) %v848_v32, 128 }
 0x31b   : > { %v853_v35 = vpop.f32.mrb[12].mxu0  ;;  %935 = vxpose.xlu0.b32.end [4/4] (short) %v850_v34, 128 }
 0x31c   : > { %v855_v36 = vpop.f32.mrb[13].mxu0  ;;  %v854_v40 = vadd.f32 %v853_v35, %v690_v38 }
 0x31d   : > { %v856_v43 = vadd.f32 %v855_v36, %v690_v38 }
 0x31f   : > { %v859_v39 = vpop.f32.mrb[14].mxu0 }
 0x320   : > { %v860_v41 = vadd.f32 %v859_v39, %v695_v37  ;;  %v861_v42 = vpop.f32.mrb[15].mxu0 }
 0x321   : > { %v862_v44 = vadd.f32 %v861_v42, %v695_v37 }
 0x322   : > { %v2247_v45 = vpack.c.bf16 %v860_v41, %v854_v40 }
 0x323   : > { %v2245_v46 = vpack.c.bf16 %v862_v44, %v856_v43  ;;  %v865_v47 = vpop.f32.mrb[16].mxu0 }
 0x324   : > { %v867_v48 = vpop.f32.mrb[17].mxu0  ;;  %v866_v52 = vadd.f32 %v865_v47, %v700_v50 }
 0x325   : > { %2246 = vmatprep.subr.bf16.mxu1 %v2245_v46  ;;  %v868_v2 = vadd.f32 %v867_v48, %v700_v50 }
 0x326   : > { %2248 = vmatpush1.bf16.msra.mxu1 %v2247_v45 }
 0x327   : > { %v871_v51 = vpop.f32.mrb[18].mxu0 }
 0x328   : > { %v872_v6 = vadd.f32 %v871_v51, %v705_v49  ;;  %v873_v7 = vpop.f32.mrb[19].mxu0 }
 0x329   : > { %v874_v4 = vadd.f32 %v873_v7, %v705_v49 }
 0x32a   : > { %v2251_v53 = vpack.c.bf16 %v872_v6, %v866_v52 }
 0x32b   : > { %v2249_v54 = vpack.c.bf16 %v874_v4, %v868_v2 }
 0x32d   : > { %2250 = vmatprep.subr.bf16.mxu1 %v2249_v54 }
 0x32e   : > { %2252 = vmatpush1.bf16.msra.mxu1 %v2251_v53 }
 0x38e   : > { %v916_v55 = vpop.trf.xlu1 }
 0x38f   : > { %2134 = vmatmul.mubr.msk.f32.vlgmr.msra.gmra.mrb[4].mxu1 %vm348_vm0, %v916_v55  ;;  %v948_v0 = vpop.trf.xlu0 }
 0x390   : > { %1130 = vmatprep.mubr.f32.mxu1 %v3682_v26 }
 0x392   : > { %v917_v56 = vpop.trf.xlu1 }
 0x393   : > { %2135 = vmatmul.mubr.msk.f32.gmra.mrb[6].mxu1 %vm348_vm0, %v917_v56  ;;  %v949_v15 = vpop.trf.xlu0 }
 0x394   : > { %1136 = vmatprep.mubr.f32.mxu1 %v3682_v26 }
 0x396   : > { %v918_v57 = vpop.trf.xlu1 }
 0x397   : > { %2136 = vmatmul.mubr.msk.f32.gmra.mrb[8].mxu1 %vm348_vm0, %v918_v57  ;;  %v950_v5 = vpop.trf.xlu0 }
 0x398   : > { %1142 = vmatprep.mubr.f32.mxu1 %v3682_v26 }
 0x39a   : > { %v919_v58 = vpop.trf.xlu1 }
 0x39b   : > { %2137 = vmatmul.mubr.msk.f32.gmra.mrb[10].mxu1 %vm348_vm0, %v919_v58  ;;  %v951_v10 = vpop.trf.xlu0 }
 0x39c   : > { %1148 = vmatprep.mubr.f32.mxu1 %v3682_v26 }
 0x39e   : > { %v920_v59 = vpop.trf.xlu1 }
 0x39f   : > { %2138 = vmatmul.mubr.msk.f32.gmra.mrb[12].mxu1 %vm348_vm0, %v920_v59  ;;  %v952_v12 = vpop.trf.xlu0 }
 0x3a0   : > { %1154 = vmatprep.mubr.f32.mxu1 %v3682_v26 }
 0x3a2   : > { %v921_v60 = vpop.trf.xlu1 }
 0x3a3   : > { %2139 = vmatmul.mubr.msk.f32.gmra.mrb[14].mxu1 %vm348_vm0, %v921_v60  ;;  %v953_v16 = vpop.trf.xlu0 }
 0x3a4   : > { %1160 = vmatprep.mubr.f32.mxu1 %v3682_v26 }
 0x3a6   : > { %v922_v61 = vpop.trf.xlu1 }
 0x3a7   : > { %2140 = vmatmul.mubr.msk.f32.gmra.mrb[16].mxu1 %vm348_vm0, %v922_v61  ;;  %v954_v17 = vpop.trf.xlu0 }
 0x3a8   : > { %1166 = vmatprep.mubr.f32.mxu1 %v3682_v26 }
 0x3aa   : > { %v923_v62 = vpop.trf.xlu1 }
 0x3ab   : > { %2141 = vmatmul.mubr.msk.f32.gmra.mrb[18].mxu1 %vm348_vm0, %v923_v62  ;;  %v955_v18 = vpop.trf.xlu0 }
 0x3ac   : > { %1172 = vmatprep.mubr.f32.mxu1 %v3682_v26 }
 0x3ae   : > { %v924_v63 = vpop.trf.xlu1 }
 0x3af   : > { %2142 = vmatmul.mubr.msk.f32.gmra.mrb[20].mxu1 %vm348_vm0, %v924_v63  ;;  %v956_v19 = vpop.trf.xlu0 }
 0x3b0   : > { %1178 = vmatprep.mubr.f32.mxu1 %v3682_v26 }
 0x3b2   : > { %v925_v1 = vpop.trf.xlu1 }
 0x3b3   : > { %2143 = vmatmul.mubr.msk.f32.gmra.mrb[22].mxu1 %vm348_vm0, %v925_v1  ;;  %v957_v20 = vpop.trf.xlu0 }
 0x3b4   : > { %1184 = vmatprep.mubr.f32.mxu1 %v3682_v26 }
 0x3b6   : > { %v926_v14 = vpop.trf.xlu1 }
 0x3b7   : > { %2144 = vmatmul.mubr.msk.f32.gmra.mrb[24].mxu1 %vm348_vm0, %v926_v14  ;;  %v958_v21 = vpop.trf.xlu0 }
 0x3b8   : > { %1190 = vmatprep.mubr.f32.mxu1 %v3682_v26 }
 0x3ba   : > { %v927_v3 = vpop.trf.xlu1 }
 0x3bb   : > { %2145 = vmatmul.mubr.msk.f32.gmra.mrb[26].mxu1 %vm348_vm0, %v927_v3  ;;  %v959_v22 = vpop.trf.xlu0 }
 0x3bc   : > { %1196 = vmatprep.mubr.f32.mxu1 %v3682_v26 }
 0x3be   : > { %v928_v8 = vpop.trf.xlu1 }
 0x3bf   : > { %2146 = vmatmul.mubr.msk.f32.gmra.mrb[28].mxu1 %vm348_vm0, %v928_v8  ;;  %v960_v23 = vpop.trf.xlu0 }
 0x3c0   : > { %1202 = vmatprep.mubr.f32.mxu1 %v3682_v26 }
 0x3c2   : > { %v929_v9 = vpop.trf.xlu1 }
 0x3c3   : > { %2147 = vmatmul.mubr.msk.f32.gmra.mrb[30].mxu1 %vm348_vm0, %v929_v9  ;;  %v961_v24 = vpop.trf.xlu0 }
 0x3c4   : > { %1208 = vmatprep.mubr.f32.mxu1 %v3682_v26 }
 0x3c6   : > { %v930_v11 = vpop.trf.xlu1 }
 0x3c7   : > { %2148 = vmatmul.mubr.msk.f32.gmra.mrb[32].mxu1 %vm348_vm0, %v930_v11  ;;  %v962_v25 = vpop.trf.xlu0 }
 0x3c8   : > { %1214 = vmatprep.mubr.f32.mxu1 %v3682_v26 }
 0x3ca   : > { %v931_v13 = vpop.trf.xlu1 }
 0x3cb   : > { %2149 = vmatmul.mubr.msk.f32.gmra.mrb[34].mxu1 %vm348_vm0, %v931_v13  ;;  %v963_v27 = vpop.trf.xlu0 }
 0x3cc   : > { %1220 = vmatprep.mubr.f32.mxu1 %v3682_v26 }
 0x3cf   : > { %2150 = vmatmul.mubr.msk.f32.gmra.mrb[36].mxu1 %vm348_vm0, %v948_v0 }
 0x3d0   : > { %1226 = vmatprep.mubr.f32.mxu1 %v3682_v26 }
 0x3d3   : > { %2151 = vmatmul.mubr.msk.f32.gmra.mrb[38].mxu1 %vm348_vm0, %v949_v15 }
 0x3d4   : > { %1232 = vmatprep.mubr.f32.mxu1 %v3682_v26 }
 0x3d7   : > { %2152 = vmatmul.mubr.msk.f32.gmra.mrb[40].mxu1 %vm348_vm0, %v950_v5 }
 0x3d8   : > { %1238 = vmatprep.mubr.f32.mxu1 %v3682_v26 }
 0x3db   : > { %2153 = vmatmul.mubr.msk.f32.gmra.mrb[42].mxu1 %vm348_vm0, %v951_v10 }
 0x3dc   : > { %1244 = vmatprep.mubr.f32.mxu1 %v3682_v26 }
 0x3df   : > { %2154 = vmatmul.mubr.msk.f32.gmra.mrb[44].mxu1 %vm348_vm0, %v952_v12 }
 0x3e0   : > { %1250 = vmatprep.mubr.f32.mxu1 %v3682_v26 }
 0x3e3   : > { %2155 = vmatmul.mubr.msk.f32.gmra.mrb[46].mxu1 %vm348_vm0, %v953_v16 }
 0x3e4   : > { %1256 = vmatprep.mubr.f32.mxu1 %v3682_v26 }
 0x3e7   : > { %2156 = vmatmul.mubr.msk.f32.gmra.mrb[48].mxu1 %vm348_vm0, %v954_v17 }
 0x3e8   : > { %1262 = vmatprep.mubr.f32.mxu1 %v3682_v26 }
 0x3eb   : > { %2157 = vmatmul.mubr.msk.f32.gmra.mrb[50].mxu1 %vm348_vm0, %v955_v18 }
 0x3ec   : > { %1268 = vmatprep.mubr.f32.mxu1 %v3682_v26 }
 0x3ef   : > { %2158 = vmatmul.mubr.msk.f32.gmra.mrb[52].mxu1 %vm348_vm0, %v956_v19 }
 0x3f0   : > { %1274 = vmatprep.mubr.f32.mxu1 %v3682_v26 }
 0x3f3   : > { %2159 = vmatmul.mubr.msk.f32.gmra.mrb[54].mxu1 %vm348_vm0, %v957_v20 }
 0x3f4   : > { %1280 = vmatprep.mubr.f32.mxu1 %v3682_v26 }
 0x3f7   : > { %2160 = vmatmul.mubr.msk.f32.gmra.mrb[56].mxu1 %vm348_vm0, %v958_v21 }
 0x3f8   : > { %1286 = vmatprep.mubr.f32.mxu1 %v3682_v26 }
 0x3fb   : > { %2161 = vmatmul.mubr.msk.f32.gmra.mrb[58].mxu1 %vm348_vm0, %v959_v22 }
 0x3fc   : > { %1292 = vmatprep.mubr.f32.mxu1 %v3682_v26 }
 0x3ff   : > { %2162 = vmatmul.mubr.msk.f32.gmra.mrb[60].mxu1 %vm348_vm0, %v960_v23 }
 0x400   : > { %1298 = vmatprep.mubr.f32.mxu1 %v3682_v26 }
 0x403   : > { %2163 = vmatmul.mubr.msk.f32.gmra.mrb[62].mxu1 %vm348_vm0, %v961_v24 }
 0x404   : > { %1304 = vmatprep.mubr.f32.mxu1 %v3682_v26 }
 0x407   : > { %2164 = vmatmul.mubr.msk.f32.gmra.mrb[64].mxu1 %vm348_vm0, %v962_v25 }
 0x408   : > { %1310 = vmatprep.mubr.f32.mxu1 %v3682_v26 }
 0x40b   : > { %2165 = vmatmul.mubr.msk.f32.gmra.mrb[66].mxu1 %vm348_vm0, %v963_v27 }
 0x40c   : > { %1990 = vmatprep.mubr.f32.mxu1 %v3682_v26 }
 0x462   : > { %v2977_v28 = vpop.f32.mrb[4].mxu1 }
 0x463   : > { %v2979_v29 = vpop.f32.mrb[5].mxu1 }
 0x464   : > { %v1317_v30 = vmax.f32 %v2977_v28, %v2979_v29 }
 0x466   : > { %1318 = vmax.xlane.f32.xlu0 %v1317_v30  ;;  %v2983_v31 = vpop.f32.mrb[6].mxu1 }
 0x467   : > { %v2985_v32 = vpop.f32.mrb[7].mxu1 }
 0x468   : > { %v1320_v33 = vmax.f32 %v2983_v31, %v2985_v32 }
 0x46a   : > { %1321 = vmax.xlane.f32.xlu1 %v1320_v33  ;;  %v2989_v34 = vpop.f32.mrb[8].mxu1 }
 0x46b   : > { %v2991_v35 = vpop.f32.mrb[9].mxu1 }
 0x46c   : > { %v1323_v36 = vmax.f32 %v2989_v34, %v2991_v35 }
 0x46e   : > { %1324 = vmax.xlane.f32.xlu0 %v1323_v36  ;;  %v2995_v37 = vpop.f32.mrb[10].mxu1 }
 0x46f   : > { %v2997_v38 = vpop.f32.mrb[11].mxu1 }
 0x470   : > { %v1326_v39 = vmax.f32 %v2995_v37, %v2997_v38 }
 0x472   : > { %1327 = vmax.xlane.f32.xlu1 %v1326_v39  ;;  %v3001_v40 = vpop.f32.mrb[12].mxu1 }
 0x473   : > { %v3003_v41 = vpop.f32.mrb[13].mxu1 }
 0x474   : > { %v1329_v42 = vmax.f32 %v3001_v40, %v3003_v41 }
 0x476   : > { %1330 = vmax.xlane.f32.xlu0 %v1329_v42  ;;  %v3007_v43 = vpop.f32.mrb[14].mxu1 }
 0x477   : > { %v3009_v44 = vpop.f32.mrb[15].mxu1 }
 0x478   : > { %v1332_v45 = vmax.f32 %v3007_v43, %v3009_v44 }
 0x47a   : > { %1333 = vmax.xlane.f32.xlu1 %v1332_v45  ;;  %v3013_v46 = vpop.f32.mrb[16].mxu1 }
 0x47b   : > { %v3015_v47 = vpop.f32.mrb[17].mxu1 }
 0x47c   : > { %v1335_v48 = vmax.f32 %v3013_v46, %v3015_v47 }
 0x47e   : > { %1336 = vmax.xlane.f32.xlu0 %v1335_v48  ;;  %v3019_v49 = vpop.f32.mrb[18].mxu1 }
 0x47f   : > { %v3021_v50 = vpop.f32.mrb[19].mxu1 }
 0x480   : > { %v1338_v51 = vmax.f32 %v3019_v49, %v3021_v50 }
 0x482   : > { %1339 = vmax.xlane.f32.xlu1 %v1338_v51  ;;  %v3025_v52 = vpop.f32.mrb[20].mxu1 }
 0x483   : > { %v3027_v6 = vpop.f32.mrb[21].mxu1 }
 0x484   : > { %v1341_v7 = vmax.f32 %v3025_v52, %v3027_v6 }
 0x486   : > { %1342 = vmax.xlane.f32.xlu0 %v1341_v7  ;;  %v3031_v2 = vpop.f32.mrb[22].mxu1 }
 0x487   : > { %v3033_v4 = vpop.f32.mrb[23].mxu1 }
 0x488   : > { %v1344_v53 = vmax.f32 %v3031_v2, %v3033_v4 }
 0x48a   : > { %1345 = vmax.xlane.f32.xlu1 %v1344_v53  ;;  %v3037_v54 = vpop.f32.mrb[24].mxu1 }
 0x48b   : > { %v3039_v55 = vpop.f32.mrb[25].mxu1 }
 0x48c   : > { %v1347_v56 = vmax.f32 %v3037_v54, %v3039_v55 }
 0x48e   : > { %1348 = vmax.xlane.f32.xlu0 %v1347_v56  ;;  %v3043_v57 = vpop.f32.mrb[26].mxu1 }
 0x48f   : > { %v3045_v58 = vpop.f32.mrb[27].mxu1 }
 0x490   : > { %v1350_v59 = vmax.f32 %v3043_v57, %v3045_v58 }
 0x492   : > { %1351 = vmax.xlane.f32.xlu1 %v1350_v59  ;;  %v3049_v60 = vpop.f32.mrb[28].mxu1 }
 0x493   : > { %v3051_v61 = vpop.f32.mrb[29].mxu1 }
 0x494   : > { %v1353_v62 = vmax.f32 %v3049_v60, %v3051_v61 }
 0x496   : > { %1354 = vmax.xlane.f32.xlu0 %v1353_v62  ;;  %v3055_v63 = vpop.f32.mrb[30].mxu1 }
 0x497   : > { %v3057_v0 = vpop.f32.mrb[31].mxu1 }
 0x498   : > { %v1356_v1 = vmax.f32 %v3055_v63, %v3057_v0 }
 0x49a   : > { %1357 = vmax.xlane.f32.xlu1 %v1356_v1  ;;  %v3061_v14 = vpop.f32.mrb[32].mxu1 }
 0x49b   : > { %v3063_v15 = vpop.f32.mrb[33].mxu1 }
 0x49c   : > { %v1359_v3 = vmax.f32 %v3061_v14, %v3063_v15 }
 0x49e   : > { %1360 = vmax.xlane.f32.xlu0 %v1359_v3  ;;  %v3067_v5 = vpop.f32.mrb[34].mxu1 }
 0x49f   : > { %v3069_v8 = vpop.f32.mrb[35].mxu1 }
 0x4a0   : > { %v1362_v9 = vmax.f32 %v3067_v5, %v3069_v8 }
 0x4a2   : > { %1363 = vmax.xlane.f32.xlu1 %v1362_v9  ;;  %v3073_v10 = vpop.f32.mrb[36].mxu1 }
 0x4a3   : > { %v3075_v11 = vpop.f32.mrb[37].mxu1 }
 0x4a4   : > { %v1365_v12 = vmax.f32 %v3073_v10, %v3075_v11 }
 0x4a6   : > { %1366 = vmax.xlane.f32.xlu0 %v1365_v12  ;;  %v3079_v13 = vpop.f32.mrb[38].mxu1 }
 0x4a7   : > { %v3081_v16 = vpop.f32.mrb[39].mxu1 }
 0x4a8   : > { %v1368_v17 = vmax.f32 %v3079_v13, %v3081_v16 }
 0x4aa   : > { %1369 = vmax.xlane.f32.xlu1 %v1368_v17  ;;  %v3085_v18 = vpop.f32.mrb[40].mxu1  ;;  %v3725_v17 = vmov 0.0  }
 0x4ab   : > { %v3087_v19 = vpop.f32.mrb[41].mxu1 }
 0x4ac   : > { %v1371_v20 = vmax.f32 %v3085_v18, %v3087_v19 }
 0x4ae   : > { %1372 = vmax.xlane.f32.xlu0 %v1371_v20  ;;  %v3091_v21 = vpop.f32.mrb[42].mxu1 }
 0x4af   : > { %3713 = vst [vmem:[#allocation5_spill] sm:$0xff] %v3091_v21  ;;  %v3093_v22 = vpop.f32.mrb[43].mxu1 }
 0x4b0   : > { %3714 = vst [vmem:[#allocation6_spill] sm:$0xff] %v3093_v22  ;;  %v1374_v23 = vmax.f32 %v3091_v21, %v3093_v22 }
 0x4b2   : > { %1375 = vmax.xlane.f32.xlu1 %v1374_v23  ;;  %v3097_v24 = vpop.f32.mrb[44].mxu1 }
 0x4b3   : > { %3715 = vst [vmem:[#allocation7_spill] sm:$0xff] %v3097_v24  ;;  %v3099_v25 = vpop.f32.mrb[45].mxu1 }
 0x4b4   : > { %3716 = vst [vmem:[#allocation8_spill] sm:$0xff] %v3099_v25  ;;  %v1377_v27 = vmax.f32 %v3097_v24, %v3099_v25 }
 0x4b6   : > { %1378 = vmax.xlane.f32.xlu0 %v1377_v27  ;;  %v3103_v30 = vpop.f32.mrb[46].mxu1  ;;  %v653_v27 = vld [vmem:[%s3677_s4 + $0x50] sm:$0xff] }
 0x4b7   : > { %3717 = vst [vmem:[#allocation9_spill] sm:$0xff] %v3103_v30  ;;  %v3105_v33 = vpop.f32.mrb[47].mxu1 }
 0x4b8   : > { %3718 = vst [vmem:[#allocation10_spill] sm:$0xff] %v3105_v33  ;;  %v1380_v36 = vmax.f32 %v3103_v30, %v3105_v33  ;;  %v654_v33 = vld [vmem:[%s3677_s4 + $0x58] sm:$0xff] }
 0x4ba   : > { %1381 = vmax.xlane.f32.xlu1 %v1380_v36  ;;  %v3109_v39 = vpop.f32.mrb[48].mxu1 }
 0x4bb   : > { %3719 = vst [vmem:[#allocation11_spill] sm:$0xff] %v3109_v39  ;;  %v3111_v42 = vpop.f32.mrb[49].mxu1 }
 0x4bc   : > { %3720 = vst [vmem:[#allocation12_spill] sm:$0xff] %v3111_v42  ;;  %v1383_v45 = vmax.f32 %v3109_v39, %v3111_v42  ;;  %v652_v42 = vld [vmem:[%s3677_s4 + $0x48] sm:$0xff] }
 0x4be   : > { %1384 = vmax.xlane.f32.xlu0 %v1383_v45  ;;  %v3115_v48 = vpop.f32.mrb[50].mxu1 }
 0x4bf   : > { %3721 = vst [vmem:[#allocation13_spill] sm:$0xff] %v3115_v48  ;;  %v3117_v51 = vpop.f32.mrb[51].mxu1 }
 0x4c0   : > { %3722 = vst [vmem:[#allocation14_spill] sm:$0xff] %v3117_v51  ;;  %v1386_v7 = vmax.f32 %v3115_v48, %v3117_v51  ;;  %v651_v48 = vld [vmem:[%s3677_s4 + $0x40] sm:$0xff] }
 0x4c1   : > { %2130 = vmatmul.mubr.msk.f32.gmra.mrb[20].mxu0 %vm348_vm0, %v651_v48 }
 0x4c2   : > { %1387 = vmax.xlane.f32.xlu1 %v1386_v7  ;;  %v3121_v53 = vpop.f32.mrb[52].mxu1  ;;  %881 = vmatprep.mubr.f32.mxu0 %v3725_v17 }
 0x4c3   : > { %v3123_v56 = vpop.f32.mrb[53].mxu1 }
 0x4c5   : > { %2131 = vmatmul.mubr.msk.f32.gmra.mrb[22].mxu0 %vm348_vm0, %v652_v42 }
 0x4c6   : > { %v3127_v62 = vpop.f32.mrb[54].mxu1  ;;  %887 = vmatprep.mubr.f32.mxu0 %v3725_v17 }
 0x4c7   : > { %3723 = vst [vmem:[#allocation15_spill] sm:$0xff] %v3127_v62  ;;  %v3129_v1 = vpop.f32.mrb[55].mxu1 }
 0x4c8   : > { %3724 = vst [vmem:[#allocation16_spill] sm:$0xff] %v3129_v1  ;;  %v1392_v3 = vmax.f32 %v3127_v62, %v3129_v1 }
 0x4c9   : > { %2132 = vmatmul.mubr.msk.f32.gmra.mrb[24].mxu0 %vm348_vm0, %v653_v27 }
 0x4ca   : > { %1393 = vmax.xlane.f32.xlu1 %v1392_v3  ;;  %v3133_v9 = vpop.f32.mrb[56].mxu1  ;;  %893 = vmatprep.mubr.f32.mxu0 %v3725_v17 }
 0x4cb   : > { %v3135_v12 = vpop.f32.mrb[57].mxu1 }
 0x4cd   : > { %2133 = vmatmul.mubr.msk.f32.gmra.mrb[26].mxu0 %vm348_vm0, %v654_v33 }
 0x4ce   : > { %v3139_v20 = vpop.f32.mrb[58].mxu1 }
 0x4cf   : > { %v3141_v23 = vpop.f32.mrb[59].mxu1 }
 0x4d2   : > { %v3145_v36 = vpop.f32.mrb[60].mxu1 }
 0x4d3   : > { %v3147_v45 = vpop.f32.mrb[61].mxu1 }
 0x4d6   : > { %v3151_v3 = vpop.f32.mrb[62].mxu1 }
 0x4d7   : > { %v3153_v59 = vpop.f32.mrb[63].mxu1 }
 0x4da   : > { %v3157_v26 = vpop.f32.mrb[64].mxu1 }
 0x4db   : > { %v3159_v1 = vpop.f32.mrb[65].mxu1 }
 0x4de   : > { %v3163_v62 = vpop.f32.mrb[66].mxu1 }
 0x4df   : > { %v3165_v51 = vpop.f32.mrb[67].mxu1 }
 0x4f3   : > { %v1319_v7 = vpop.xlane.xlu0 %1318 }
 0x4f4   : > { %v1413_v39 = vsub.f32 %v2977_v28, %v1319_v7  ;;  %v1414_v48 = vsub.f32 %v2979_v29, %v1319_v7 }
 0x4f6   : > { %v1477_v42 = vmul.f32 1.442695, %v1413_v39  ;;  %v1479_v30 = vmul.f32 1.442695, %v1414_v48 }
 0x4f7   : > { %v1322_v25 = vpop.xlane.xlu1 %1321 }
 0x4f8   : > { %2378 = vpow2.f32 %v1477_v42  ;;  %v1415_v24 = vsub.f32 %v2983_v31, %v1322_v25  ;;  %v1416_v27 = vsub.f32 %v2985_v32, %v1322_v25 }
 0x4f9   : > { %2380 = vpow2.f32 %v1479_v30 }
 0x4fa   : > { %v1481_v28 = vmul.f32 1.442695, %v1415_v24  ;;  %v1483_v22 = vmul.f32 1.442695, %v1416_v27 }
 0x4fb   : > { %v1325_v29 = vpop.xlane.xlu0 %1324 }
 0x4fc   : > { %2382 = vpow2.f32 %v1481_v28  ;;  %v1417_v7 = vsub.f32 %v2989_v34, %v1325_v29  ;;  %v1418_v17 = vsub.f32 %v2991_v35, %v1325_v29 }
 0x4fd   : > { %2384 = vpow2.f32 %v1483_v22 }
 0x4fe   : > { %v1485_v39 = vmul.f32 1.442695, %v1417_v7  ;;  %v1487_v48 = vmul.f32 1.442695, %v1418_v17 }
 0x4ff   : > { %v1328_v21 = vpop.xlane.xlu1 %1327 }
 0x500   : > { %2386 = vpow2.f32 %v1485_v39  ;;  %v1419_v33 = vsub.f32 %v2995_v37, %v1328_v21  ;;  %v1420_v31 = vsub.f32 %v2997_v38, %v1328_v21 }
 0x501   : > { %2388 = vpow2.f32 %v1487_v48  ;;  %v3726_v48 = vmax.f32 %v3121_v53, %v3123_v56 }
 0x502   : > { %v3196_v32 = vpop.eup %2378  ;;  %v1489_v24 = vmul.f32 1.442695, %v1419_v33  ;;  %v1491_v25 = vmul.f32 1.442695, %v1420_v31 }
 0x503   : > { %v3198_v30 = vpop.eup %2380  ;;  %v1331_v42 = vpop.xlane.xlu0 %1330 }
 0x504   : > { %2390 = vpow2.f32 %v1489_v24  ;;  %v1421_v34 = vsub.f32 %v3001_v40, %v1331_v42  ;;  %v1422_v35 = vsub.f32 %v3003_v41, %v1331_v42  ;;  %v1605_v22 = vadd.f32 %v3198_v30, %v3196_v32 }
 0x505   : > { %2392 = vpow2.f32 %v1491_v25 }
 0x506   : > { %v3204_v37 = vpop.eup %2382  ;;  %v1493_v38 = vmul.f32 1.442695, %v1421_v34  ;;  %v1495_v21 = vmul.f32 1.442695, %v1422_v35  ;;  %1606 = vadd.xlane.f32.xlu0 %v1605_v22  ;;  %v3727_v35 = vmax.f32 %v3139_v20, %v3141_v23 }
 0x507   : > { %v3206_v17 = vpop.eup %2384  ;;  %v1334_v27 = vpop.xlane.xlu1 %1333 }
 0x508   : > { %2394 = vpow2.f32 %v1493_v38  ;;  %v1423_v28 = vsub.f32 %v3007_v43, %v1334_v27  ;;  %v1424_v29 = vsub.f32 %v3009_v44, %v1334_v27  ;;  %v1608_v40 = vadd.f32 %v3206_v17, %v3204_v37 }
 0x509   : > { %2396 = vpow2.f32 %v1495_v21 }
 0x50a   : > { %v3212_v41 = vpop.eup %2386  ;;  %v1497_v7 = vmul.f32 1.442695, %v1423_v28  ;;  %v1499_v39 = vmul.f32 1.442695, %v1424_v29  ;;  %1609 = vadd.xlane.f32.xlu1 %v1608_v40  ;;  %1390 = vmax.xlane.f32.xlu0 %v3726_v48  ;;  %v3728_v40 = vmax.f32 %v3133_v9, %v3135_v12 }
 0x50b   : > { %v3217_v33 = vpop.eup %2388  ;;  %v1337_v31 = vpop.xlane.xlu0 %1336 }
 0x50c   : > { %2398 = vpow2.f32 %v1497_v7  ;;  %v1425_v43 = vsub.f32 %v3013_v46, %v1337_v31  ;;  %v1426_v44 = vsub.f32 %v3015_v47, %v1337_v31  ;;  %v1611_v24 = vadd.f32 %v3217_v33, %v3212_v41 }
 0x50d   : > { %2400 = vpow2.f32 %v1499_v39 }
 0x50e   : > { %v3223_v25 = vpop.eup %2390  ;;  %v1501_v42 = vmul.f32 1.442695, %v1425_v43  ;;  %v1503_v34 = vmul.f32 1.442695, %v1426_v44  ;;  %1399 = vmax.xlane.f32.xlu1 %v3727_v35  ;;  %1612 = vadd.xlane.f32.xlu0 %v1611_v24  ;;  %v3729_v24 = vmax.f32 %v3151_v3, %v3153_v59 }
 0x50f   : > { %v3228_v22 = vpop.eup %2392  ;;  %v1340_v38 = vpop.xlane.xlu1 %1339 }
 0x510   : > { %2402 = vpow2.f32 %v1501_v42  ;;  %v1427_v46 = vsub.f32 %v3019_v49, %v1340_v38  ;;  %v1428_v47 = vsub.f32 %v3021_v50, %v1340_v38  ;;  %v1614_v21 = vadd.f32 %v3228_v22, %v3223_v25 }
 0x511   : > { %2404 = vpow2.f32 %v1503_v34 }
 0x512   : > { %v3234_v27 = vpop.eup %2394  ;;  %v1505_v28 = vmul.f32 1.442695, %v1427_v46  ;;  %v1507_v29 = vmul.f32 1.442695, %v1428_v47  ;;  %1615 = vadd.xlane.f32.xlu1 %v1614_v21  ;;  %1396 = vmax.xlane.f32.xlu0 %v3728_v40  ;;  %v3730_v21 = vmax.f32 %v3145_v36, %v3147_v45 }
 0x513   : > { %v3239_v7 = vpop.eup %2396  ;;  %v1343_v39 = vpop.xlane.xlu0 %1342 }
 0x514   : > { %2406 = vpow2.f32 %v1505_v28  ;;  %v1429_v49 = vsub.f32 %v3025_v52, %v1343_v39  ;;  %v1430_v50 = vsub.f32 %v3027_v6, %v1343_v39  ;;  %v1617_v48 = vadd.f32 %v3239_v7, %v3234_v27 }
 0x515   : > { %2408 = vpow2.f32 %v1507_v29 }
 0x516   : > { %v3245_v31 = vpop.eup %2398  ;;  %v1509_v43 = vmul.f32 1.442695, %v1429_v49  ;;  %v1511_v44 = vmul.f32 1.442695, %v1430_v50  ;;  %1405 = vmax.xlane.f32.xlu1 %v3729_v24  ;;  %1618 = vadd.xlane.f32.xlu0 %v1617_v48  ;;  %v3731_v48 = vmax.f32 %v3163_v62, %v3165_v51 }
 0x517   : > { %v3250_v42 = vpop.eup %2400  ;;  %v1346_v34 = vpop.xlane.xlu1 %1345 }
 0x518   : > { %2410 = vpow2.f32 %v1509_v43  ;;  %v1431_v52 = vsub.f32 %v3031_v2, %v1346_v34  ;;  %v1432_v6 = vsub.f32 %v3033_v4, %v1346_v34  ;;  %v1620_v35 = vadd.f32 %v3250_v42, %v3245_v31 }
 0x519   : > { %2412 = vpow2.f32 %v1511_v44 }
 0x51a   : > { %v3256_v38 = vpop.eup %2402  ;;  %v1513_v46 = vmul.f32 1.442695, %v1431_v52  ;;  %v1515_v47 = vmul.f32 1.442695, %v1432_v6  ;;  %1621 = vadd.xlane.f32.xlu1 %v1620_v35  ;;  %1402 = vmax.xlane.f32.xlu0 %v3730_v21  ;;  %v3732_v35 = vmax.f32 %v3157_v26, %v3159_v1 }
 0x51b   : > { %v3261_v28 = vpop.eup %2404  ;;  %v1349_v29 = vpop.xlane.xlu0 %1348 }
 0x51c   : > { %2414 = vpow2.f32 %v1513_v46  ;;  %v1433_v2 = vsub.f32 %v3037_v54, %v1349_v29  ;;  %v1434_v4 = vsub.f32 %v3039_v55, %v1349_v29  ;;  %v1623_v40 = vadd.f32 %v3261_v28, %v3256_v38 }
 0x51d   : > { %2416 = vpow2.f32 %v1515_v47 }
 0x51e   : > { %v3267_v39 = vpop.eup %2406  ;;  %v1517_v49 = vmul.f32 1.442695, %v1433_v2  ;;  %v1519_v50 = vmul.f32 1.442695, %v1434_v4  ;;  %1411 = vmax.xlane.f32.xlu1 %v3731_v48  ;;  %1624 = vadd.xlane.f32.xlu0 %v1623_v40 }
 0x51f   : > { %v3272_v43 = vpop.eup %2408  ;;  %v1352_v44 = vpop.xlane.xlu1 %1351 }
 0x520   : > { %2418 = vpow2.f32 %v1517_v49  ;;  %v1435_v54 = vsub.f32 %v3043_v57, %v1352_v44  ;;  %v1436_v55 = vsub.f32 %v3045_v58, %v1352_v44  ;;  %v1626_v24 = vadd.f32 %v3272_v43, %v3267_v39 }
 0x521   : > { %2420 = vpow2.f32 %v1519_v50 }
 0x522   : > { %v3278_v34 = vpop.eup %2410  ;;  %v1521_v52 = vmul.f32 1.442695, %v1435_v54  ;;  %v1523_v6 = vmul.f32 1.442695, %v1436_v55  ;;  %1627 = vadd.xlane.f32.xlu1 %v1626_v24  ;;  %1408 = vmax.xlane.f32.xlu0 %v3732_v35 }
 0x523   : > { %v3283_v46 = vpop.eup %2412  ;;  %v1355_v47 = vpop.xlane.xlu0 %1354 }
 0x524   : > { %2422 = vpow2.f32 %v1521_v52  ;;  %v1437_v57 = vsub.f32 %v3049_v60, %v1355_v47  ;;  %v1438_v58 = vsub.f32 %v3051_v61, %v1355_v47  ;;  %v1629_v21 = vadd.f32 %v3283_v46, %v3278_v34 }
 0x525   : > { %2424 = vpow2.f32 %v1523_v6 }
 0x526   : > { %v3289_v29 = vpop.eup %2414  ;;  %v1525_v2 = vmul.f32 1.442695, %v1437_v57  ;;  %v1527_v4 = vmul.f32 1.442695, %v1438_v58  ;;  %1630 = vadd.xlane.f32.xlu0 %v1629_v21 }
 0x527   : > { %v3291_v40 = vpop.eup %2416  ;;  %v1358_v49 = vpop.xlane.xlu1 %1357 }
 0x528   : > { %2426 = vpow2.f32 %v1525_v2  ;;  %v1439_v50 = vsub.f32 %v3055_v63, %v1358_v49  ;;  %v1440_v48 = vsub.f32 %v3057_v0, %v1358_v49  ;;  %v1632_v60 = vadd.f32 %v3291_v40, %v3289_v29 }
 0x529   : > { %2428 = vpow2.f32 %v1527_v4 }
 0x52a   : > { %v3297_v61 = vpop.eup %2418  ;;  %v1529_v44 = vmul.f32 1.442695, %v1439_v50  ;;  %v1531_v54 = vmul.f32 1.442695, %v1440_v48  ;;  %1633 = vadd.xlane.f32.xlu1 %v1632_v60 }
 0x52b   : > { %v3299_v55 = vpop.eup %2420  ;;  %v1361_v24 = vpop.xlane.xlu0 %1360 }
 0x52c   : > { %2430 = vpow2.f32 %v1529_v44  ;;  %v1441_v52 = vsub.f32 %v3061_v14, %v1361_v24  ;;  %v1442_v6 = vsub.f32 %v3063_v15, %v1361_v24  ;;  %v1635_v63 = vadd.f32 %v3299_v55, %v3297_v61 }
 0x52d   : > { %2432 = vpow2.f32 %v1531_v54 }
 0x52e   : > { %v3305_v0 = vpop.eup %2422  ;;  %v1533_v35 = vmul.f32 1.442695, %v1441_v52  ;;  %v1535_v47 = vmul.f32 1.442695, %v1442_v6  ;;  %1636 = vadd.xlane.f32.xlu0 %v1635_v63 }
 0x52f   : > { %v3307_v57 = vpop.eup %2424  ;;  %v1364_v58 = vpop.xlane.xlu1 %1363 }
 0x530   : > { %2434 = vpow2.f32 %v1533_v35  ;;  %v1443_v21 = vsub.f32 %v3067_v5, %v1364_v58  ;;  %v1444_v2 = vsub.f32 %v3069_v8, %v1364_v58  ;;  %v1638_v14 = vadd.f32 %v3307_v57, %v3305_v0 }
 0x531   : > { %2436 = vpow2.f32 %v1535_v47 }
 0x532   : > { %v3313_v15 = vpop.eup %2426  ;;  %v1537_v4 = vmul.f32 1.442695, %v1443_v21  ;;  %v1539_v49 = vmul.f32 1.442695, %v1444_v2  ;;  %1639 = vadd.xlane.f32.xlu1 %v1638_v14 }
 0x533   : > { %v3315_v50 = vpop.eup %2428  ;;  %v1367_v48 = vpop.xlane.xlu0 %1366 }
 0x534   : > { %2438 = vpow2.f32 %v1537_v4  ;;  %v1445_v60 = vsub.f32 %v3073_v10, %v1367_v48  ;;  %v1446_v44 = vsub.f32 %v3075_v11, %v1367_v48  ;;  %v1641_v5 = vadd.f32 %v3315_v50, %v3313_v15 }
 0x535   : > { %2440 = vpow2.f32 %v1539_v49 }
 0x536   : > { %v3321_v8 = vpop.eup %2430  ;;  %v1541_v54 = vmul.f32 1.442695, %v1445_v60  ;;  %v1543_v24 = vmul.f32 1.442695, %v1446_v44  ;;  %1642 = vadd.xlane.f32.xlu0 %v1641_v5  ;;  %v3733_v5 = vld [vmem:[#allocation5_spill] sm:$0xff] }
 0x537   : > { %v3323_v52 = vpop.eup %2432  ;;  %v1370_v6 = vpop.xlane.xlu1 %1369 }
 0x538   : > { %2442 = vpow2.f32 %v1541_v54  ;;  %v1447_v63 = vsub.f32 %v3079_v13, %v1370_v6  ;;  %v1448_v35 = vsub.f32 %v3081_v16, %v1370_v6  ;;  %v1644_v10 = vadd.f32 %v3323_v52, %v3321_v8 }
 0x539   : > { %2444 = vpow2.f32 %v1543_v24  ;;  %v3734_v24 = vld [vmem:[#allocation6_spill] sm:$0xff] }
 0x53a   : > { %v3329_v11 = vpop.eup %2434  ;;  %v1545_v47 = vmul.f32 1.442695, %v1447_v63  ;;  %v1547_v58 = vmul.f32 1.442695, %v1448_v35  ;;  %1645 = vadd.xlane.f32.xlu1 %v1644_v10 }
 0x53b   : > { %v3331_v21 = vpop.eup %2436  ;;  %v1373_v2 = vpop.xlane.xlu0 %1372 }
 0x53c   : > { %2446 = vpow2.f32 %v1545_v47  ;;  %v1449_v14 = vsub.f32 %v3085_v18, %v1373_v2  ;;  %v1450_v4 = vsub.f32 %v3087_v19, %v1373_v2  ;;  %v1647_v13 = vadd.f32 %v3331_v21, %v3329_v11 }
 0x53d   : > { %2448 = vpow2.f32 %v1547_v58  ;;  %v3737_v58 = vld [vmem:[#allocation7_spill] sm:$0xff] }
 0x53e   : > { %v3337_v16 = vpop.eup %2438  ;;  %v1549_v49 = vmul.f32 1.442695, %v1449_v14  ;;  %v1551_v48 = vmul.f32 1.442695, %v1450_v4  ;;  %1648 = vadd.xlane.f32.xlu0 %v1647_v13  ;;  %v3738_v14 = vld [vmem:[#allocation8_spill] sm:$0xff] }
 0x53f   : > { %v3339_v60 = vpop.eup %2440  ;;  %v1376_v44 = vpop.xlane.xlu1 %1375 }
 0x540   : > { %2450 = vpow2.f32 %v1549_v49  ;;  %v1451_v54 = vsub.f32 %v3733_v5, %v1376_v44  ;;  %v1452_v6 = vsub.f32 %v3734_v24, %v1376_v44  ;;  %v1650_v18 = vadd.f32 %v3339_v60, %v3337_v16  ;;  %v3741_v24 = vld [vmem:[#allocation9_spill] sm:$0xff] }
 0x541   : > { %2452 = vpow2.f32 %v1551_v48 }
 0x542   : > { %v3345_v19 = vpop.eup %2442  ;;  %v1553_v63 = vmul.f32 1.442695, %v1451_v54  ;;  %v1555_v35 = vmul.f32 1.442695, %v1452_v6  ;;  %1651 = vadd.xlane.f32.xlu1 %v1650_v18  ;;  %v3742_v18 = vld [vmem:[#allocation10_spill] sm:$0xff] }
 0x543   : > { %3735 = vst [vmem:[#allocation5_spill] sm:$0xff] %v3345_v19  ;;  %v3347_v10 = vpop.eup %2444  ;;  %v1379_v47 = vpop.xlane.xlu0 %1378 }
 0x544   : > { %3736 = vst [vmem:[#allocation6_spill] sm:$0xff] %v3347_v10  ;;  %2454 = vpow2.f32 %v1553_v63  ;;  %v1453_v2 = vsub.f32 %v3737_v58, %v1379_v47  ;;  %v1454_v4 = vsub.f32 %v3738_v14, %v1379_v47  ;;  %v1653_v13 = vadd.f32 %v3347_v10, %v3345_v19 }
 0x545   : > { %2456 = vpow2.f32 %v1555_v35 }
 0x546   : > { %v3353_v49 = vpop.eup %2446  ;;  %v1557_v48 = vmul.f32 1.442695, %v1453_v2  ;;  %v1559_v44 = vmul.f32 1.442695, %v1454_v4  ;;  %1654 = vadd.xlane.f32.xlu0 %v1653_v13  ;;  %v3744_v13 = vld [vmem:[#allocation11_spill] sm:$0xff] }
 0x547   : > { %3739 = vst [vmem:[#allocation7_spill] sm:$0xff] %v3353_v49  ;;  %v3355_v5 = vpop.eup %2448  ;;  %v1382_v54 = vpop.xlane.xlu1 %1381 }
 0x548   : > { %3740 = vst [vmem:[#allocation8_spill] sm:$0xff] %v3355_v5  ;;  %2458 = vpow2.f32 %v1557_v48  ;;  %v1455_v6 = vsub.f32 %v3741_v24, %v1382_v54  ;;  %v1456_v63 = vsub.f32 %v3742_v18, %v1382_v54  ;;  %v1656_v47 = vadd.f32 %v3355_v5, %v3353_v49  ;;  %v3745_v48 = vld [vmem:[#allocation12_spill] sm:$0xff] }
 0x549   : > { %2460 = vpow2.f32 %v1559_v44 }
 0x54a   : > { %v3361_v58 = vpop.eup %2450  ;;  %v1561_v35 = vmul.f32 1.442695, %v1455_v6  ;;  %v1563_v14 = vmul.f32 1.442695, %v1456_v63  ;;  %1657 = vadd.xlane.f32.xlu1 %v1656_v47  ;;  %v3746_v47 = vld [vmem:[#allocation13_spill] sm:$0xff] }
 0x54b   : > { %3743 = vst [vmem:[#allocation9_spill] sm:$0xff] %v3361_v58  ;;  %v3363_v2 = vpop.eup %2452  ;;  %v1385_v4 = vpop.xlane.xlu0 %1384 }
 0x54c   : > { %2462 = vpow2.f32 %v1561_v35  ;;  %v1457_v19 = vsub.f32 %v3744_v13, %v1385_v4  ;;  %v1458_v10 = vsub.f32 %v3745_v48, %v1385_v4  ;;  %v1659_v54 = vadd.f32 %v3363_v2, %v3361_v58  ;;  %v3747_v35 = vld [vmem:[#allocation14_spill] sm:$0xff] }
 0x54d   : > { %2464 = vpow2.f32 %v1563_v14 }
 0x54e   : > { %v3369_v24 = vpop.eup %2454  ;;  %v1565_v44 = vmul.f32 1.442695, %v1457_v19  ;;  %v1567_v18 = vmul.f32 1.442695, %v1458_v10  ;;  %1660 = vadd.xlane.f32.xlu0 %v1659_v54 }
 0x54f   : > { %v3371_v6 = vpop.eup %2456  ;;  %v1388_v63 = vpop.xlane.xlu1 %1387 }
 0x550   : > { %2466 = vpow2.f32 %v1565_v44  ;;  %v1459_v49 = vsub.f32 %v3746_v47, %v1388_v63  ;;  %v1460_v5 = vsub.f32 %v3747_v35, %v1388_v63  ;;  %v1662_v4 = vadd.f32 %v3371_v6, %v3369_v24  ;;  %v3751_v47 = vld [vmem:[#allocation15_spill] sm:$0xff]  ;;  %v3752_v35 = vld [vmem:[#allocation16_spill] sm:$0xff] }
 0x551   : > { %2468 = vpow2.f32 %v1567_v18 }
 0x552   : > { %v3377_v13 = vpop.eup %2458  ;;  %v1569_v14 = vmul.f32 1.442695, %v1459_v49  ;;  %v1571_v48 = vmul.f32 1.442695, %v1460_v5  ;;  %1663 = vadd.xlane.f32.xlu1 %v1662_v4 }
 0x553   : > { %3748 = vst [vmem:[#allocation10_spill] sm:$0xff] %v3377_v13  ;;  %v3379_v19 = vpop.eup %2460 }
 0x554   : > { %2470 = vpow2.f32 %v1569_v14  ;;  %v1665_v10 = vadd.f32 %v3379_v19, %v3377_v13 }
 0x555   : > { %2472 = vpow2.f32 %v1571_v48 }
 0x556   : > { %v3383_v54 = vpop.eup %2462  ;;  %1666 = vadd.xlane.f32.xlu0 %v1665_v10 }
 0x557   : > { %3749 = vst [vmem:[#allocation11_spill] sm:$0xff] %v3383_v54  ;;  %v3385_v44 = vpop.eup %2464  ;;  %v1394_v63 = vpop.xlane.xlu1 %1393 }
 0x558   : > { %3750 = vst [vmem:[#allocation12_spill] sm:$0xff] %v3385_v44  ;;  %v1463_v18 = vsub.f32 %v3751_v47, %v1394_v63  ;;  %v1464_v58 = vsub.f32 %v3752_v35, %v1394_v63  ;;  %v1668_v49 = vadd.f32 %v3385_v44, %v3383_v54 }
 0x55a   : > { %v3391_v5 = vpop.eup %2466  ;;  %v1577_v4 = vmul.f32 1.442695, %v1463_v18  ;;  %v1579_v14 = vmul.f32 1.442695, %v1464_v58  ;;  %1669 = vadd.xlane.f32.xlu1 %v1668_v49 }
 0x55b   : > { %3753 = vst [vmem:[#allocation13_spill] sm:$0xff] %v3391_v5  ;;  %v3393_v13 = vpop.eup %2468 }
 0x55c   : > { %3754 = vst [vmem:[#allocation14_spill] sm:$0xff] %v3393_v13  ;;  %2474 = vpow2.f32 %v1577_v4  ;;  %v1671_v48 = vadd.f32 %v3393_v13, %v3391_v5 }
 0x55d   : > { %2476 = vpow2.f32 %v1579_v14 }
 0x55e   : > { %v3397_v10 = vpop.eup %2470  ;;  %1672 = vadd.xlane.f32.xlu0 %v1671_v48 }
 0x55f   : > { %3755 = vst [vmem:[#allocation15_spill] sm:$0xff] %v3397_v10  ;;  %v3399_v47 = vpop.eup %2472 }
 0x560   : > { %3756 = vst [vmem:[#allocation16_spill] sm:$0xff] %v3399_v47  ;;  %v1674_v63 = vadd.f32 %v3399_v47, %v3397_v10 }
 0x562   : > { %1675 = vadd.xlane.f32.xlu1 %v1674_v63 }
 0x566   : > { %v3403_v35 = vpop.eup %2474 }
 0x567   : > { %3757 = vst [vmem:[#allocation17_spill] sm:$0xff] %v3403_v35  ;;  %v3405_v58 = vpop.eup %2476 }
 0x568   : > { %3758 = vst [vmem:[#allocation18_spill] sm:$0xff] %v3405_v58  ;;  %v1680_v18 = vadd.f32 %v3405_v58, %v3403_v35 }
 0x56a   : > { %1681 = vadd.xlane.f32.xlu1 %v1680_v18 }
 0x593   : > { %v1607_v49 = vpop.xlane.xlu0 %1606 }
 0x594   : > { %2478 = vrcp.f32 %v1607_v49 }
 0x597   : > { %v1610_v4 = vpop.xlane.xlu1 %1609  ;;  %v1391_v14 = vpop.xlane.xlu0 %1390 }
 0x598   : > { %2480 = vrcp.f32 %v1610_v4  ;;  %v1461_v48 = vsub.f32 %v3121_v53, %v1391_v14  ;;  %v1462_v5 = vsub.f32 %v3123_v56, %v1391_v14 }
 0x59a   : > { %v1573_v13 = vmul.f32 1.442695, %v1461_v48  ;;  %v1575_v10 = vmul.f32 1.442695, %v1462_v5 }
 0x59b   : > { %v1400_v63 = vpop.xlane.xlu1 %1399  ;;  %v1613_v47 = vpop.xlane.xlu0 %1612 }
 0x59c   : > { %2482 = vpow2.f32 %v1573_v13  ;;  %v1467_v54 = vsub.f32 %v3139_v20, %v1400_v63  ;;  %v1468_v44 = vsub.f32 %v3141_v23, %v1400_v63 }
 0x59d   : > { %2484 = vpow2.f32 %v1575_v10 }
 0x59e   : > { %v1585_v18 = vmul.f32 1.442695, %v1467_v54  ;;  %v1587_v35 = vmul.f32 1.442695, %v1468_v44  ;;  %2486 = vrcp.f32 %v1613_v47  ;;  %v2479_v4 = vpop.eup %2478 }
 0x59f   : > { %v1616_v49 = vpop.xlane.xlu1 %1615  ;;  %v1397_v58 = vpop.xlane.xlu0 %1396  ;;  %v1734_v23 = vmul.f32 %v2479_v4, %v3198_v30  ;;  %v1733_v44 = vmul.f32 %v2479_v4, %v3196_v32 }
 0x5a0   : > { %2488 = vpow2.f32 %v1585_v18  ;;  %v1465_v53 = vsub.f32 %v3133_v9, %v1397_v58  ;;  %v1466_v56 = vsub.f32 %v3135_v12, %v1397_v58 }
 0x5a1   : > { %2490 = vpow2.f32 %v1587_v35 }
 0x5a2   : > { %v2481_v5 = vpop.eup %2480  ;;  %2492 = vrcp.f32 %v1616_v49  ;;  %v1581_v13 = vmul.f32 1.442695, %v1465_v53  ;;  %v1583_v14 = vmul.f32 1.442695, %v1466_v56 }
 0x5a3   : > { %v1406_v20 = vpop.xlane.xlu1 %1405  ;;  %v1619_v48 = vpop.xlane.xlu0 %1618  ;;  %v1736_v54 = vmul.f32 %v2481_v5, %v3206_v17  ;;  %v1735_v10 = vmul.f32 %v2481_v5, %v3204_v37 }
 0x5a4   : > { %2494 = vpow2.f32 %v1581_v13  ;;  %v1471_v9 = vsub.f32 %v3151_v3, %v1406_v20  ;;  %v1472_v12 = vsub.f32 %v3153_v59, %v1406_v20 }
 0x5a5   : > { %2496 = vpow2.f32 %v1583_v14  ;;  %v2253_v47 = vpack.c.bf16 %v1736_v54, %v1734_v23  ;;  %v2255_v35 = vpack.c.bf16 %v1735_v10, %v1733_v44 }
 0x5a6   : > { %v3421_v58 = vpop.eup %2482  ;;  %v1593_v63 = vmul.f32 1.442695, %v1471_v9  ;;  %v1595_v18 = vmul.f32 1.442695, %v1472_v12  ;;  %2498 = vrcp.f32 %v1619_v48 }
 0x5a7   : > { %v3423_v49 = vpop.eup %2484  ;;  %v1622_v30 = vpop.xlane.xlu1 %1621  ;;  %2254 = vmatprep.subr.bf16.mxu0 %v2253_v47 }
 0x5a8   : > { %v1403_v32 = vpop.xlane.xlu0 %1402  ;;  %2500 = vpow2.f32 %v1593_v63  ;;  %2256 = vmatpush1.bf16.xpose.msra.mxu0 %v2255_v35  ;;  %v1677_v59 = vadd.f32 %v3423_v49, %v3421_v58  ;;  %v2487_v17 = vpop.eup %2486 }
 0x5a9   : > { %v1469_v37 = vsub.f32 %v3145_v36, %v1403_v32  ;;  %v1470_v3 = vsub.f32 %v3147_v45, %v1403_v32  ;;  %2502 = vpow2.f32 %v1595_v18  ;;  %v1738_v20 = vmul.f32 %v2487_v17, %v3217_v33 }
 0x5aa   : > { %v3429_v4 = vpop.eup %2488  ;;  %2504 = vrcp.f32 %v1622_v30  ;;  %1678 = vadd.xlane.f32.xlu0 %v1677_v59  ;;  %v1737_v23 = vmul.f32 %v2487_v17, %v3212_v41 }
 0x5ab   : > { %v1589_v53 = vmul.f32 1.442695, %v1469_v37  ;;  %v1591_v56 = vmul.f32 1.442695, %v1470_v3  ;;  %v3431_v5 = vpop.eup %2490  ;;  %v3433_v13 = vpop.xlane.xlu1 %1411 }
 0x5ac   : > { %v1625_v14 = vpop.xlane.xlu0 %1624  ;;  %v2493_v36 = vpop.eup %2492  ;;  %v1686_v45 = vadd.f32 %v3431_v5, %v3429_v4 }
 0x5ad   : > { %2506 = vpow2.f32 %v1589_v53  ;;  %v1740_v48 = vmul.f32 %v2493_v36, %v3228_v22  ;;  %v1739_v54 = vmul.f32 %v2493_v36, %v3223_v25 }
 0x5ae   : > { %2508 = vpow2.f32 %v1591_v56  ;;  %v3441_v44 = vpop.eup %2494  ;;  %1687 = vadd.xlane.f32.xlu1 %v1686_v45 }
 0x5af   : > { %v3443_v10 = vpop.eup %2496  ;;  %v1628_v9 = vpop.xlane.xlu1 %1627  ;;  %v2257_v12 = vpack.c.bf16 %v1740_v48, %v1738_v20  ;;  %v2259_v35 = vpack.c.bf16 %v1739_v54, %v1737_v23  ;;  %2510 = vrcp.f32 %v1625_v14 }
 0x5b0   : > { %v1409_v47 = vpop.xlane.xlu0 %1408  ;;  %v1683_v22 = vadd.f32 %v3443_v10, %v3441_v44  ;;  %v2499_v41 = vpop.eup %2498  ;;  %2512 = vrcp.f32 %v1628_v9 }
 0x5b1   : > { %v1473_v63 = vsub.f32 %v3157_v26, %v1409_v47  ;;  %v1474_v33 = vsub.f32 %v3159_v1, %v1409_v47  ;;  %2258 = vmatprep.subr.bf16.mxu0 %v2257_v12  ;;  %v1742_v1 = vmul.f32 %v2499_v41, %v3239_v7  ;;  %v1741_v17 = vmul.f32 %v2499_v41, %v3234_v27 }
 0x5b2   : > { %v3449_v25 = vpop.eup %2500  ;;  %2260 = vmatpush1.bf16.xpose.msra.mxu0 %v2259_v35  ;;  %1684 = vadd.xlane.f32.xlu0 %v1683_v22 }
 0x5b3   : > { %v1597_v18 = vmul.f32 1.442695, %v1473_v63  ;;  %v1599_v30 = vmul.f32 1.442695, %v1474_v33  ;;  %v3451_v32 = vpop.eup %2502 }
 0x5b4   : > { %v1631_v37 = vpop.xlane.xlu0 %1630  ;;  %v2505_v3 = vpop.eup %2504  ;;  %v1692_v26 = vadd.f32 %v3451_v32, %v3449_v25 }
 0x5b5   : > { %2514 = vpow2.f32 %v1597_v18  ;;  %v1744_v59 = vmul.f32 %v2505_v3, %v3250_v42  ;;  %v1743_v53 = vmul.f32 %v2505_v3, %v3245_v31  ;;  %v3482_v3 = vpop.f32.mrb[20].mxu0 }
 0x5b6   : > { %2516 = vpow2.f32 %v1599_v30  ;;  %1693 = vadd.xlane.f32.xlu1 %v1692_v26  ;;  %v664_v30 = vld [vmem:[%s3678_s5 + $0x48] sm:$0xff] }
 0x5b7   : > { %v3459_v56 = vpop.eup %2506  ;;  %2518 = vrcp.f32 %v1631_v37  ;;  %v1634_v36 = vpop.xlane.xlu1 %1633  ;;  %v2261_v45 = vpack.c.bf16 %v1744_v59, %v1742_v1  ;;  %v2263_v20 = vpack.c.bf16 %v1743_v53, %v1741_v17 }
 0x5b8   : > { %v3461_v14 = vpop.eup %2508  ;;  %2520 = vrcp.f32 %v1634_v36  ;;  %v3484_v1 = vpop.f32.mrb[21].mxu0 }
 0x5b9   : > { %v1689_v7 = vadd.f32 %v3461_v14, %v3459_v56  ;;  %2262 = vmatprep.subr.bf16.mxu0 %v2261_v45  ;;  %v2511_v48 = vpop.eup %2510  ;;  %v3486_v17 = vpop.f32.mrb[22].mxu0 }
 0x5ba   : > { %2264 = vmatpush1.bf16.xpose.msra.mxu0 %v2263_v20  ;;  %v2513_v42 = vpop.eup %2512  ;;  %v1746_v31 = vmul.f32 %v2511_v48, %v3261_v28  ;;  %v1745_v54 = vmul.f32 %v2511_v48, %v3256_v38 }
 0x5bb   : > { %1690 = vadd.xlane.f32.xlu0 %v1689_v7  ;;  %v1637_v27 = vpop.xlane.xlu0 %1636  ;;  %v1748_v23 = vmul.f32 %v2513_v42, %v3272_v43  ;;  %v1747_v9 = vmul.f32 %v2513_v42, %v3267_v39 }
 0x5bc   : > { %2522 = vrcp.f32 %v1637_v27 }
 0x5bd   : > { %v2265_v63 = vpack.c.bf16 %v1748_v23, %v1746_v31  ;;  %v2267_v33 = vpack.c.bf16 %v1747_v9, %v1745_v54  ;;  %v1475_v54 = vsub.f32 %v3163_v62, %v3433_v13 }
 0x5bf   : > { %v3469_v12 = vpop.eup %2514  ;;  %v1640_v35 = vpop.xlane.xlu1 %1639  ;;  %2266 = vmatprep.subr.bf16.mxu0 %v2265_v63  ;;  %v663_v63 = vld [vmem:[%s3678_s5 + $0x40] sm:$0xff]  ;;  %v1601_v62 = vmul.f32 1.442695, %v1475_v54 }
 0x5c0   : > { %v3471_v47 = vpop.eup %2516  ;;  %2524 = vrcp.f32 %v1640_v35 }
 0x5c1   : > { %v2519_v22 = vpop.eup %2518  ;;  %v1695_v41 = vadd.f32 %v3471_v47, %v3469_v12 }
 0x5c2   : > { %v2521_v28 = vpop.eup %2520  ;;  %2268 = vmatpush1.bf16.xpose.msra.mxu0 %v2267_v33  ;;  %v1750_v39 = vmul.f32 %v2519_v22, %v3283_v46  ;;  %v1749_v37 = vmul.f32 %v2519_v22, %v3278_v34 }
 0x5c3   : > { %1696 = vadd.xlane.f32.xlu0 %v1695_v41  ;;  %v1643_v38 = vpop.xlane.xlu0 %1642  ;;  %v1752_v43 = vmul.f32 %v2521_v28, %v3291_v40  ;;  %v1751_v18 = vmul.f32 %v2521_v28, %v3289_v29  ;;  %v3488_v40 = vpop.f32.mrb[23].mxu0 }
 0x5c4   : > { %2526 = vrcp.f32 %v1643_v38 }
 0x5c5   : > { %v2269_v26 = vpack.c.bf16 %v1752_v43, %v1750_v39  ;;  %v2271_v59 = vpack.c.bf16 %v1751_v18, %v1749_v37 }
 0x5c6   : > { %v2523_v29 = vpop.eup %2522 }
 0x5c7   : > { %714 = vperm.xlu1 %2368, %v664_v30   ;;  %v1646_v46 = vpop.xlane.xlu1 %1645  ;;  %2270 = vmatprep.subr.bf16.mxu0 %v2269_v26  ;;  %v1754_v34 = vmul.f32 %v2523_v29, %v3299_v55  ;;  %v1753_v7 = vmul.f32 %v2523_v29, %v3297_v61  ;;  %v1476_v61 = vsub.f32 %v3165_v51, %v3433_v13  ;;  %v666_v51 = vld [vmem:[%s3678_s5 + $0x58] sm:$0xff]  ;;  %v1891_v26 = vld [vmem:[%s3680_s7 + $0x8] sm:$0xff] }
 0x5c8   : > { %2528 = vrcp.f32 %v1646_v46 }
 0x5c9   : > { %v1603_v28 = vmul.f32 1.442695, %v1476_v61 }
 0x5ca   : > { %v2525_v53 = vpop.eup %2524  ;;  %2272 = vmatpush1.bf16.xpose.msra.mxu0 %v2271_v59 }
 0x5cb   : > { %v1649_v36 = vpop.xlane.xlu0 %1648  ;;  %v1756_v45 = vmul.f32 %v2525_v53, %v3307_v57  ;;  %v1755_v20 = vmul.f32 %v2525_v53, %v3305_v0 }
 0x5cc   : > { %2530 = vrcp.f32 %v1649_v36 }
 0x5cd   : > { %v2273_v48 = vpack.c.bf16 %v1756_v45, %v1754_v34  ;;  %v2275_v27 = vpack.c.bf16 %v1755_v20, %v1753_v7  ;;  %v3760_v34 = vld [vmem:[#allocation8_spill] sm:$0xff]  ;;  %v3761_v20 = vld [vmem:[#allocation7_spill] sm:$0xff] }
 0x5ce   : > { %v2527_v31 = vpop.eup %2526 }
 0x5cf   : > { %v1652_v42 = vpop.xlane.xlu1 %1651  ;;  %2274 = vmatprep.subr.bf16.mxu0 %v2273_v48  ;;  %v1758_v55 = vmul.f32 %v2527_v31, %v3315_v50  ;;  %v1757_v35 = vmul.f32 %v2527_v31, %v3313_v15  ;;  %v3762_v48 = vld [vmem:[#allocation5_spill] sm:$0xff] }
 0x5d0   : > { %2532 = vrcp.f32 %v1652_v42 }
 0x5d2   : > { %v2529_v23 = vpop.eup %2528  ;;  %2276 = vmatpush1.bf16.xpose.msra.mxu0 %v2275_v27 }
 0x5d3   : > { %v1655_v9 = vpop.xlane.xlu0 %1654  ;;  %v1760_v57 = vmul.f32 %v2529_v23, %v3323_v52  ;;  %v1759_v0 = vmul.f32 %v2529_v23, %v3321_v8  ;;  %v3505_v8 = vpop.f32.mrb[24].mxu0 }
 0x5d4   : > { %2534 = vrcp.f32 %v1655_v9  ;;  %v3510_v15 = vpop.f32.mrb[25].mxu0 }
 0x5d5   : > { %v2277_v33 = vpack.c.bf16 %v1760_v57, %v1758_v55  ;;  %v2279_v22 = vpack.c.bf16 %v1759_v0, %v1757_v35  ;;  %v3512_v13 = vpop.f32.mrb[26].mxu0 }
 0x5d6   : > { %v2531_v50 = vpop.eup %2530  ;;  %v3517_v30 = vpop.f32.mrb[27].mxu0 }
 0x5d7   : > { %v1658_v41 = vpop.xlane.xlu1 %1657  ;;  %2278 = vmatprep.subr.bf16.mxu0 %v2277_v33  ;;  %v1762_v39 = vmul.f32 %v2531_v50, %v3331_v21  ;;  %v1761_v37 = vmul.f32 %v2531_v50, %v3329_v11  ;;  %v3759_v11 = vld [vmem:[#allocation6_spill] sm:$0xff] }
 0x5d8   : > { %2536 = vrcp.f32 %v1658_v41 }
 0x5d9   : > { %709 = vperm.xlu0 %2369, %v663_v63   ;;  %2538 = vpow2.f32 %v1601_v62 }
 0x5da   : > { %v2533_v52 = vpop.eup %2532  ;;  %2280 = vmatpush1.bf16.xpose.msra.mxu0 %v2279_v22  ;;  %2540 = vpow2.f32 %v1603_v28  ;;  %v3763_v22 = vld [vmem:[#allocation9_spill] sm:$0xff] }
 0x5db   : > { %v1661_v38 = vpop.xlane.xlu0 %1660  ;;  %v1764_v43 = vmul.f32 %v2533_v52, %v3339_v60  ;;  %v1763_v18 = vmul.f32 %v2533_v52, %v3337_v16  ;;  %v1893_v16 = vld [vmem:[%s3680_s7 + $0x18] sm:$0xff] }
 0x5dc   : > { %2542 = vrcp.f32 %v1661_v38 }
 0x5dd   : > { %724 = vperm.xlu0 %2369, %v666_v51   ;;  %v2281_v59 = vpack.c.bf16 %v1764_v43, %v1762_v39  ;;  %v2283_v46 = vpack.c.bf16 %v1763_v18, %v1761_v37  ;;  %v3764_v39 = vld [vmem:[#allocation12_spill] sm:$0xff] }
 0x5de   : > { %v2535_v21 = vpop.eup %2534 }
 0x5df   : > { %v1664_v29 = vpop.xlane.xlu1 %1663  ;;  %2282 = vmatprep.subr.bf16.mxu0 %v2281_v59  ;;  %v1766_v36 = vmul.f32 %v2535_v21, %v3759_v11  ;;  %v1765_v27 = vmul.f32 %v2535_v21, %v3762_v48  ;;  %v3767_v21 = vld [vmem:[#allocation14_spill] sm:$0xff]  ;;  %v1892_v48 = vld [vmem:[%s3680_s7 + $0x10] sm:$0xff] }
 0x5e0   : > { %2544 = vrcp.f32 %v1664_v29 }
 0x5e1   : > { %1901 = vperm.xlu0 %2369, %v1891_v26  }
 0x5e2   : > { %v2537_v60 = vpop.eup %2536  ;;  %2284 = vmatpush1.bf16.xpose.msra.mxu0 %v2283_v46  ;;  %v665_v46 = vld [vmem:[%s3678_s5 + $0x50] sm:$0xff] }
 0x5e3   : > { %v1667_v53 = vpop.xlane.xlu0 %1666  ;;  %v1768_v45 = vmul.f32 %v2537_v60, %v3760_v34  ;;  %v1767_v7 = vmul.f32 %v2537_v60, %v3761_v20  ;;  %v3530_v42 = vpop.eup %2538  ;;  %v3768_v60 = vld [vmem:[#allocation16_spill] sm:$0xff] }
 0x5e4   : > { %v3532_v23 = vpop.eup %2540  ;;  %2546 = vrcp.f32 %v1667_v53  ;;  %v3769_v53 = vld [vmem:[#allocation15_spill] sm:$0xff] }
 0x5e5   : > { %1911 = vperm.xlu0 %2369, %v1893_v16   ;;  %v2285_v31 = vpack.c.bf16 %v1768_v45, %v1766_v36  ;;  %v2287_v54 = vpack.c.bf16 %v1767_v7, %v1765_v27  ;;  %v1698_v57 = vadd.f32 %v3532_v23, %v3530_v42  ;;  %v3770_v36 = vld [vmem:[#allocation13_spill] sm:$0xff] }
 0x5e6   : > { %v2543_v55 = vpop.eup %2542  ;;  %v1890_v45 = vld [vmem:[%s3680_s7] sm:$0xff] }
 0x5e7   : > { %v1670_v9 = vpop.xlane.xlu1 %1669  ;;  %2286 = vmatprep.subr.bf16.mxu0 %v2285_v31  ;;  %v1770_v35 = vmul.f32 %v2543_v55, %v3363_v2  ;;  %v1769_v62 = vmul.f32 %v2543_v55, %v3763_v22  ;;  %v3765_v2 = vld [vmem:[#allocation11_spill] sm:$0xff]  ;;  %v3772_v22 = vld [vmem:[#allocation17_spill] sm:$0xff] }
 0x5e8   : > { %2548 = vrcp.f32 %v1670_v9 }
 0x5ea   : > { %v2545_v0 = vpop.eup %2544  ;;  %2288 = vmatpush1.bf16.xpose.msra.mxu0 %v2287_v54 }
 0x5eb   : > { %1699 = vadd.xlane.f32.xlu1 %v1698_v57  ;;  %v1673_v61 = vpop.xlane.xlu0 %1672  ;;  %v1772_v63 = vmul.f32 %v2545_v0, %v3371_v6  ;;  %v1771_v33 = vmul.f32 %v2545_v0, %v3369_v24  ;;  %v3766_v6 = vld [vmem:[#allocation10_spill] sm:$0xff] }
 0x5ec   : > { %2550 = vrcp.f32 %v1673_v61 }
 0x5ed   : > { %v2289_v41 = vpack.c.bf16 %v1772_v63, %v1770_v35  ;;  %v2291_v50 = vpack.c.bf16 %v1771_v33, %v1769_v62  ;;  %v3771_v35 = vld [vmem:[#allocation18_spill] sm:$0xff] }
 0x5ee   : > { %v2547_v51 = vpop.eup %2546 }
 0x5ef   : > { %v1676_v28 = vpop.xlane.xlu1 %1675  ;;  %2290 = vmatprep.subr.bf16.mxu0 %v2289_v41  ;;  %v1774_v38 = vmul.f32 %v2547_v51, %v3379_v19  ;;  %v1773_v37 = vmul.f32 %v2547_v51, %v3766_v6 }
 0x5f0   : > { %2552 = vrcp.f32 %v1676_v28 }
 0x5f2   : > { %v2549_v52 = vpop.eup %2548  ;;  %2292 = vmatpush1.bf16.xpose.msra.mxu0 %v2291_v50 }
 0x5f3   : > { %v1776_v43 = vmul.f32 %v2549_v52, %v3764_v39  ;;  %v1775_v18 = vmul.f32 %v2549_v52, %v3765_v2 }
 0x5f5   : > { %v2293_v24 = vpack.c.bf16 %v1776_v43, %v1774_v38  ;;  %v2295_v26 = vpack.c.bf16 %v1775_v18, %v1773_v37 }
 0x5f6   : > { %v2551_v59 = vpop.eup %2550 }
 0x5f7   : > { %2294 = vmatprep.subr.bf16.mxu0 %v2293_v24  ;;  %v1778_v16 = vmul.f32 %v2551_v59, %v3767_v21  ;;  %v1777_v34 = vmul.f32 %v2551_v59, %v3770_v36  ;;  %v1682_v27 = vpop.xlane.xlu1 %1681 }
 0x5f8   : > { %2554 = vrcp.f32 %v1682_v27 }
 0x5fa   : > { %v2553_v29 = vpop.eup %2552  ;;  %2296 = vmatpush1.bf16.xpose.msra.mxu0 %v2295_v26 }
 0x5fb   : > { %v1780_v19 = vmul.f32 %v2553_v29, %v3768_v60  ;;  %v1779_v11 = vmul.f32 %v2553_v29, %v3769_v53 }
 0x5fc   : > { %719 = vperm.xlu1 %2368, %v665_v46  }
 0x5fd   : > { %v2297_v20 = vpack.c.bf16 %v1780_v19, %v1778_v16  ;;  %v2299_v7 = vpack.c.bf16 %v1779_v11, %v1777_v34 }
 0x5ff   : > { %2298 = vmatprep.subr.bf16.mxu0 %v2297_v20 }
 0x600   : > { %1896 = vperm.xlu1 %2368, %v1890_v45  }
 0x602   : > { %2300 = vmatpush1.bf16.xpose.msra.mxu0 %v2299_v7  ;;  %v2555_v55 = vpop.eup %2554 }
 0x603   : > { %v1784_v63 = vmul.f32 %v2555_v55, %v3771_v35  ;;  %v1783_v62 = vmul.f32 %v2555_v55, %v3772_v22  ;;  %v1887_v55 = vld [vmem:[%s3679_s6 + $0x8] sm:$0xff] }
 0x604   : > { %1906 = vperm.xlu1 %2368, %v1892_v48  }
 0x637   : > { %v1679_v31 = vpop.xlane.xlu0 %1678 }
 0x638   : > { %2556 = vrcp.f32 %v1679_v31 }
 0x63b   : > { %v1688_v54 = vpop.xlane.xlu1 %1687 }
 0x63c   : > { %2558 = vrcp.f32 %v1688_v54 }
 0x63f   : > { %v1685_v9 = vpop.xlane.xlu0 %1684 }
 0x640   : > { %2560 = vrcp.f32 %v1685_v9  ;;  %v3773_v9 = vmov 0.0  }
 0x642   : > { %v2557_v57 = vpop.eup %2556 }
 0x643   : > { %v1694_v0 = vpop.xlane.xlu1 %1693  ;;  %v1782_v61 = vmul.f32 %v2557_v57, %v3423_v49  ;;  %v1781_v33 = vmul.f32 %v2557_v57, %v3421_v58  ;;  %v1888_v57 = vld [vmem:[%s3679_s6 + $0x10] sm:$0xff] }
 0x644   : > { %2562 = vrcp.f32 %v1694_v0  ;;  %v1889_v0 = vld [vmem:[%s3679_s6 + $0x18] sm:$0xff] }
 0x645   : > { %v2301_v41 = vpack.c.bf16 %v1784_v63, %v1782_v61  ;;  %v2303_v50 = vpack.c.bf16 %v1783_v62, %v1781_v33  ;;  %v2570_v62 = vld [vmem:[%s2745_s21] sm:$0xff] }
 0x646   : > { %v2559_v51 = vpop.eup %2558 }
 0x647   : > { %2302 = vmatprep.subr.bf16.mxu0 %v2301_v41  ;;  %v1788_v39 = vmul.f32 %v2559_v51, %v3431_v5  ;;  %v1787_v43 = vmul.f32 %v2559_v51, %v3429_v4  ;;  %v715_v29 = vpop.permute.xlu1 %714 }
 0x648   : > { %v1691_v28 = vpop.xlane.xlu0 %1690  ;;  %2304 = vmatpush1.bf16.xpose.msra.mxu0 %v2303_v50  ;;  %v886_v11 = vadd.f32 %v3488_v40, %v715_v29  ;;  %v884_v34 = vadd.f32 %v3486_v17, %v715_v29 }
 0x649   : > { %2564 = vrcp.f32 %v1691_v28  ;;  %v2571_v28 = vld [vmem:[%s2745_s21 + $0x8] sm:$0xff] }
 0x64a   : > { %v2561_v52 = vpop.eup %2560 }
 0x64b   : > { %v1786_v38 = vmul.f32 %v2561_v52, %v3443_v10  ;;  %v1785_v49 = vmul.f32 %v2561_v52, %v3441_v44 }
 0x64d   : > { %v2305_v58 = vpack.c.bf16 %v1788_v39, %v1786_v38  ;;  %v2307_v2 = vpack.c.bf16 %v1787_v43, %v1785_v49  ;;  %v2572_v43 = vld [vmem:[%s2745_s21 + $0x10] sm:$0xff] }
 0x64e   : > { %v2563_v18 = vpop.eup %2562 }
 0x64f   : > { %2306 = vmatprep.subr.bf16.mxu0 %v2305_v58  ;;  %v1792_v26 = vmul.f32 %v2563_v18, %v3451_v32  ;;  %v1791_v10 = vmul.f32 %v2563_v18, %v3449_v25  ;;  %v2573_v18 = vld [vmem:[%s2745_s21 + $0x18] sm:$0xff] }
 0x650   : > { %2308 = vmatpush1.bf16.xpose.msra.mxu0 %v2307_v2  ;;  %v1697_v37 = vpop.xlane.xlu0 %1696 }
 0x651   : > { %2566 = vrcp.f32 %v1697_v37 }
 0x653   : > { %v2565_v6 = vpop.eup %2564 }
 0x654   : > { %v1790_v24 = vmul.f32 %v2565_v6, %v3461_v14  ;;  %v1789_v59 = vmul.f32 %v2565_v6, %v3459_v56 }
 0x656   : > { %v2309_v5 = vpack.c.bf16 %v1792_v26, %v1790_v24  ;;  %v2311_v46 = vpack.c.bf16 %v1791_v10, %v1789_v59  ;;  %v2574_v10 = vld [vmem:[%s2745_s21 + $0x20] sm:$0xff] }
 0x658   : > { %2310 = vmatprep.subr.bf16.mxu0 %v2309_v5  ;;  %v710_v44 = vpop.permute.xlu0 %709 }
 0x659   : > { %v880_v4 = vadd.f32 %v3484_v1, %v710_v44  ;;  %2312 = vmatpush1.bf16.xpose.msra.mxu0 %v2311_v46  ;;  %v878_v1 = vadd.f32 %v3482_v3, %v710_v44  ;;  %v2575_v44 = vld [vmem:[%s2745_s21 + $0x28] sm:$0xff] }
 0x65b   : > { %1861 = vmatprep.mubr.f32.mxu0 %v880_v4  ;;  %v2567_v16 = vpop.eup %2566 }
 0x65c   : > { %v1794_v32 = vmul.f32 %v2567_v16, %v3471_v47  ;;  %v1793_v25 = vmul.f32 %v2567_v16, %v3469_v12 }
 0x678   : > { %v1700_v21 = vpop.xlane.xlu1 %1699 }
 0x679   : > { %2568 = vrcp.f32 %v1700_v21 }
 0x67c   : > { %v720_v36 = vpop.permute.xlu1 %719 }
 0x67d   : > { %v892_v47 = vadd.f32 %v3510_v15, %v720_v36  ;;  %v890_v12 = vadd.f32 %v3505_v8, %v720_v36 }
 0x680   : > { %v1897_v61 = vpop.permute.xlu1 %1896 }
 0x683   : > { %v2569_v14 = vpop.eup %2568 }
 0x684   : > { %v1796_v56 = vmul.f32 %v2569_v14, %v3532_v23  ;;  %v1795_v60 = vmul.f32 %v2569_v14, %v3530_v42  ;;  %v725_v23 = vpop.permute.xlu0 %724  ;;  %v1907_v2 = vpop.permute.xlu1 %1906 }
 0x685   : > { %v898_v42 = vadd.f32 %v3517_v30, %v725_v23  ;;  %v896_v3 = vadd.f32 %v3512_v13, %v725_v23  ;;  %v1886_v13 = vld [vmem:[%s3679_s6] sm:$0xff] }
 0x686   : > { %v2313_v19 = vpack.c.bf16 %v1796_v56, %v1794_v32  ;;  %v2315_v53 = vpack.c.bf16 %v1795_v60, %v1793_v25  ;;  %v2576_v32 = vld [vmem:[%s2745_s21 + $0x30] sm:$0xff]  ;;  %v2577_v25 = vld [vmem:[%s2745_s21 + $0x38] sm:$0xff] }
 0x688   : > { %2314 = vmatprep.subr.bf16.mxu0 %v2313_v19  ;;  %v1902_v50 = vpop.permute.xlu0 %1901 }
 0x689   : > { %2316 = vmatpush1.bf16.xpose.msra.mxu0 %v2315_v53 }
 0x68c   : > { %v1912_v46 = vpop.permute.xlu0 %1911 }
 0x690   : > { %1862 = vmatmul.mubr.f32.vlgmr.msra.gmra.mrb[28].mxu0 %v878_v1 }
 0x691   : > { %1867 = vmatprep.mubr.f32.mxu0 %v886_v11 }
 0x694   : > { %1868 = vmatmul.mubr.f32.gmra.mrb[30].mxu0 %v884_v34 }
 0x695   : > { %1873 = vmatprep.mubr.f32.mxu0 %v892_v47 }
 0x698   : > { %1874 = vmatmul.mubr.f32.gmra.mrb[32].mxu0 %v890_v12 }
 0x699   : > { %1879 = vmatprep.mubr.f32.mxu0 %v898_v42 }
 0x69c   : > { %1880 = vmatmul.mubr.f32.gmra.mrb[34].mxu0 %v896_v3 }
 0x763   : > { %v1863_v40 = vpop.f32.mrb[28].mxu0 }
 0x764   : > { %v1865_v45 = vpop.f32.mrb[29].mxu0 }
 0x767   : > { %v1869_v20 = vpop.f32.mrb[30].mxu0 }
 0x768   : > { %v2319_v7 = vpack.c.bf16 %v1869_v20, %v1863_v40  ;;  %v1871_v48 = vpop.f32.mrb[31].mxu0 }
 0x769   : > { %v2317_v17 = vpack.c.bf16 %v1871_v48, %v1865_v45 }
 0x76b   : > { %v1875_v27 = vpop.f32.mrb[32].mxu0  ;;  %2318 = vmatprep.subr.bf16.mxu1 %v2317_v17 }
 0x76c   : > { %v1877_v15 = vpop.f32.mrb[33].mxu0  ;;  %2320 = vmatpush1.bf16.msra.mxu1 %v2319_v7 }
 0x76f   : > { %v1881_v31 = vpop.f32.mrb[34].mxu0 }
 0x770   : > { %v2323_v54 = vpack.c.bf16 %v1881_v31, %v1875_v27  ;;  %v1883_v8 = vpop.f32.mrb[35].mxu0 }
 0x771   : > { %v2321_v30 = vpack.c.bf16 %v1883_v8, %v1877_v15 }
 0x773   : > { %2322 = vmatprep.subr.bf16.mxu1 %v2321_v30 }
 0x774   : > { %2324 = vmatpush1.bf16.msra.mxu1 %v2323_v54 }
 0x777   : > { %2166 = vmatmul.mubr.msk.f32.vlgmr.msra.gmra.mrb[68].mxu1 %vm348_vm0, %v1886_v13 }
 0x778   : > { %1996 = vmatprep.mubr.f32.mxu1 %v3773_v9 }
 0x77b   : > { %2167 = vmatmul.mubr.msk.f32.gmra.mrb[70].mxu1 %vm348_vm0, %v1887_v55 }
 0x77c   : > { %2002 = vmatprep.mubr.f32.mxu1 %v3773_v9 }
 0x77f   : > { %2168 = vmatmul.mubr.msk.f32.gmra.mrb[72].mxu1 %vm348_vm0, %v1888_v57 }
 0x780   : > { %2008 = vmatprep.mubr.f32.mxu1 %v3773_v9 }
 0x783   : > { %2169 = vmatmul.mubr.msk.f32.gmra.mrb[74].mxu1 %vm348_vm0, %v1889_v0 }
 0x84a   : > { %v1992_v35 = vpop.f32.mrb[68].mxu1 }
 0x84b   : > { %v1993_v63 = vadd.f32 %v1992_v35, %v1897_v61  ;;  %v1994_v33 = vpop.f32.mrb[69].mxu1 }
 0x84c   : > { %v1995_v22 = vadd.f32 %v1994_v33, %v1897_v61 }
 0x84d   : > { %v2015_v41 = vadd.f32 %v2570_v62, %v1993_v63 }
 0x84e   : > { %v2016_v51 = vadd.f32 %v2571_v28, %v1995_v22  ;;  %v1998_v52 = vpop.f32.mrb[70].mxu1 }
 0x84f   : > { %2023 = vst [vmem:[%s3605_s12] sm:$0xff] %v2015_v41  ;;  %v1999_v38 = vadd.f32 %v1998_v52, %v1902_v50  ;;  %v2000_v39 = vpop.f32.mrb[71].mxu1 }
 0x850   : > { %2024 = vst [vmem:[%s3605_s12 + $0x8] sm:$0xff] %v2016_v51  ;;  %v2001_v49 = vadd.f32 %v2000_v39, %v1902_v50 }
 0x851   : > { %v2017_v58 = vadd.f32 %v2572_v43, %v1999_v38 }
 0x852   : > { %v2018_v6 = vadd.f32 %v2573_v18, %v2001_v49  ;;  %v2004_v37 = vpop.f32.mrb[72].mxu1 }
 0x853   : > { %2025 = vst [vmem:[%s3605_s12 + $0x10] sm:$0xff] %v2017_v58  ;;  %v2005_v24 = vadd.f32 %v2004_v37, %v1907_v2  ;;  %v2006_v26 = vpop.f32.mrb[73].mxu1 }
 0x854   : > { %2026 = vst [vmem:[%s3605_s12 + $0x18] sm:$0xff] %v2018_v6  ;;  %v2007_v59 = vadd.f32 %v2006_v26, %v1907_v2 }
 0x855   : > { %v2019_v5 = vadd.f32 %v2574_v10, %v2005_v24 }
 0x856   : > { %v2020_v4 = vadd.f32 %v2575_v44, %v2007_v59  ;;  %v2010_v29 = vpop.f32.mrb[74].mxu1 }
 0x857   : > { %2027 = vst [vmem:[%s3605_s12 + $0x20] sm:$0xff] %v2019_v5  ;;  %v2011_v21 = vadd.f32 %v2010_v29, %v1912_v46  ;;  %v2012_v16 = vpop.f32.mrb[75].mxu1 }
 0x858   : > { %2028 = vst [vmem:[%s3605_s12 + $0x28] sm:$0xff] %v2020_v4  ;;  %v2013_v14 = vadd.f32 %v2012_v16, %v1912_v46 }
 0x859   : > { %v2021_v56 = vadd.f32 %v2576_v32, %v2011_v21 }
 0x85a   : > { %v2022_v60 = vadd.f32 %v2577_v25, %v2013_v14 }
 0x85b   : > { %2029 = vst [vmem:[%s3605_s12 + $0x30] sm:$0xff] %v2021_v56 }
 0x85c   : > { %2030 = vst [vmem:[%s3605_s12 + $0x38] sm:$0xff] %v2022_v60 }
 0x85d   : > { %2591 = shalt.err (!%p2588_p3)
}
 0x85e   : > { %s2592_s21 = scalar_lea.hbm %s3623_s20, 1024  ;;  %s2596_s12 = scalar_lea.hbm %s3681_s8, 2048 }
 0x85f   : > { %p2593_p4 = scmp.ne.s32.totalorder %s3623_s20, %s2592_s21  ;;  %p2597_p9 = scmp.lt.u32.totalorder %s3623_s20, %s3681_s8 }
 0x860   : > { %p2598_p10 = scmp.lt.u32.totalorder %s2596_s12, %s2592_s21  ;;  %p2600_p12 = scmp.lt.u32.totalorder %s2592_s21, %s3623_s20 }
 0x861   : > { %p2594_p7 = pnand %p2593_p4, %p2730_p5 }
 0x862   : > { %p2599_p11 = por %p2598_p10, %p2597_p9 }
 0x863   : > { %p2595_p8 = pneg %p2594_p7 }
 0x864   : > { %p2601_p13 = por %p2600_p12, %p2599_p11 }
 0x866   : > { %p2602_p0 = pnand %p2601_p13, %p2595_p8 }
 0x868   : > { %2605 = shalt.err (!%p2602_p0)
}
 0x869   : > { %s2645_s19 = smov 256   ;;  %s2646_s22 = smov 16  }
 0x86a   : > { %2325 = dma.vmem_to_hbm [thread:$0]  (%p2730_p5), %s3625_s17, 1024, %s3623_s20, %s3632_s9, %s2645_s19, %s2645_s19, %s2646_s22  }
 0x86b PF: > { %p2331_p1 = scmp.ge.s32.totalorder %s2640_s30, 2  ;;  %s2060_s23 = sand.u32 1, %s2628_s27  }
 0x86c   : > { %s2061_s24 = scalar_lea.sflag [#allocation3], %s2060_s23 }
 0x86d   : > { %p2328_p2 = pnand %p2331_p1, %p2734_p6 }
 0x86f   : > { %2623 = dma.done.wait (!%p2328_p2), %s2061_s24, 1024  }
 0x870   : > { %2625 = vsyncadd (!%p2328_p2), %s2061_s24, 4294966272  ;;  %p18_p3 = scmp.ge.s32.totalorder %s2717_s11, 4   ;;  %s3774_s27 = smov %s2632_s28 }
 0x871   : > { %s3775_s28 = smov %s2636_s29  ;;  %s3776_s29 = smov %s2728_s14 }
 0x872   : > { %s3777_s30 = smov %s2717_s11  ;;  %20 = sbr.rel (!%p18_p3) target bundleno = 3 (0x3), region = 87 }
 0x879   :  { %2066 = vsyncpa [#allocation3], 1 }
 0x87a   :  { %2068 = vsyncpa [#allocation3 + $0x1], 1 }

</bundles_post_ra>
